<compile_context>
chip_gen: v6e
topology: v6e:2x2x1
jax: 0.10.0
libtpu: 0.0.40
codegen_flags: <defaults>
</compile_context>

<pallas_src>
import jax
import jax.numpy as jnp
from jax import lax
from jax.experimental import pallas as pl
from jax.experimental.pallas import tpu as pltpu

EPS = 1e-5  # nn.InstanceNorm1d default eps


def _inorm(v):
    # InstanceNorm1d(affine=False): normalize each row over the last axis.
    # PyTorch-style variance: mean((x - mu)^2)  (no E[x^2]-mu^2 cancellation).
    mu = jnp.mean(v, axis=-1, keepdims=True)
    c = v - mu
    var = jnp.mean(c * c, axis=-1, keepdims=True)
    return c * lax.rsqrt(var + EPS)


def gru_classifier_kernel(
    x_ref, seq_ref,
    w1_ref, b1_ref, w2_ref, b2_ref,
    wih_ref, bx_ref, whh_ref, bhn_ref,
    wf1_ref, bf1_ref, wf2_ref, bf2_ref,
    out_ref,
):
    Bb = seq_ref.shape[0]          # batch rows handled by this grid block
    H = whh_ref.shape[0]           # hidden size
    S = x_ref.shape[0] // Bb       # timesteps (x rows are time-major in-block)

    def dot(a, b):
        # MXU operand dtype follows the (possibly bf16) weight dtype;
        # accumulate in f32 so all downstream elementwise math stays f32.
        return jnp.dot(a.astype(b.dtype), b, preferred_element_type=jnp.float32)

    # ---------------- time-invariant work, hoisted out of the recurrence ----
    # MLP over all (t, b) rows at once: two large MXU matmuls + row-wise norms.
    a = jnp.maximum(dot(x_ref[...], w1_ref[...]) + b1_ref[...], 0.0)   # (S*Bb, 128)
    a = _inorm(a)                                      # Dropout(0.1): eval identity
    a = jnp.maximum(dot(a, w2_ref[...]) + b2_ref[...], 0.0)            # (S*Bb, H)
    a = _inorm(a)

    # GRU input projections for every timestep, gate-fused, with
    # time-invariant biases folded in: bx = [b_ir+b_hr, b_iz+b_hz, b_in].
    gx = dot(a, wih_ref[...]) + bx_ref[...]                            # (S*Bb, 3H)
    gx_rz = gx[:, :2 * H]                              # r|z columns (fused)
    gx_n = gx[:, 2 * H:]                               # n columns

    whh = whh_ref[...]                                 # (H, 3H) fused [Whr|Whz|Whn]
    bhn = jnp.broadcast_to(bhn_ref[...], (Bb, H))      # hoisted broadcast
    seq_b = jnp.broadcast_to(seq_ref[...], (Bb, H))    # hoisted broadcast (gather idx)

    h0 = jnp.zeros((Bb, H), jnp.float32)
    sel0 = jnp.zeros((Bb, H), jnp.float32)

    # -------- serial recurrence: one (Bb,H)x(H,3H) matmul + VPU/EUP per step --------
    # TODO(synk): keep whh resident in the MXU (matmul_push_rhs / matmul_acc_lhs /
    # matmul_pop) to drop the per-step weight push from the latency chain.
    def step(t, h, sel, gxrz_t, gxn_t):
        gh = dot(h, whh)                               # (Bb, 3H), single MXU push
        rz = jax.nn.sigmoid(gxrz_t + gh[:, :2 * H])    # fused r/z: one EUP pass
        r, z = rz[:, :H], rz[:, H:]
        n = jnp.tanh(gxn_t + r * (gh[:, 2 * H:] + bhn))
        h = (1.0 - z) * n + z * h
        sel = jnp.where(seq_b == t, h, sel)            # fused out[b, seq[b], :] gather
        return h, sel

    if S <= 16:
        # Tiny static S: full unroll keeps the LLO scheduler's whole view.
        h, sel = h0, sel0
        for t in range(S):
            lo = t * Bb
            h, sel = step(t, h, sel, gx_rz[lo:lo + Bb], gx_n[lo:lo + Bb])
    else:
        # Larger S: visible loop bounds live ranges / vreg pressure.
        gx_rz3 = gx_rz.reshape(S, Bb, 2 * H)
        gx_n3 = gx_n.reshape(S, Bb, H)

        def body(t, carry):
            h, sel = carry
            return step(t, h, sel, gx_rz3[t], gx_n3[t])

        h, sel = lax.fori_loop(0, S, body, (h0, sel0), unroll=2)

    # ---------------- FC head (lane-dense padded output) ----------------
    y = jnp.maximum(dot(sel, wf1_ref[...]) + bf1_ref[...], 0.0)        # (Bb, H//2)
    y = _inorm(y)                                      # Dropout(0.1): eval identity
    out_ref[...] = dot(y, wf2_ref[...]) + bf2_ref[...]                 # (Bb, C_pad=128k)


_PARAM_ORDER = ("w1", "b1", "w2", "b2", "wih", "bx", "whh", "bhn",
                "wf1", "bf1", "wf2", "bf2")


def init_params(key, input_size, num_classes, hidden_size=32):
    H = hidden_size
    Hh = H // 2
    ks = jax.random.split(key, 12)

    def u(k, shape, s=0.1):
        return jax.random.uniform(k, shape, jnp.float32, -s, s)

    p = {}
    p["w1"], p["b1"] = u(ks[0], (input_size, 128)), u(ks[1], (1, 128))
    p["w2"], p["b2"] = u(ks[2], (128, H)), u(ks[3], (1, H))

    # GRU weights stored transposed & gate-fused (PyTorch gate order r, z, n):
    #   wih = W_ih^T (H, 3H), whh = W_hh^T (H, 3H)
    #   bx  = [b_ir + b_hr, b_iz + b_hz, b_in]   (1, 3H)  -- combined biases
    #   bhn = b_hn (1, H) -- must stay separate (multiplied by r inside tanh)
    wih, whh = u(ks[4], (H, 3 * H)), u(ks[5], (H, 3 * H))
    bih, bhh = u(ks[6], (1, 3 * H)), u(ks[7], (1, 3 * H))
    p["wih"], p["whh"] = wih, whh
    p["bx"] = jnp.concatenate(
        [bih[:, :2 * H] + bhh[:, :2 * H], bih[:, 2 * H:]], axis=1)
    p["bhn"] = bhh[:, 2 * H:]

    p["wf1"], p["bf1"] = u(ks[8], (H, Hh)), u(ks[9], (1, Hh))
    p["wf2"], p["bf2"] = u(ks[10], (Hh, num_classes)), u(ks[11], (1, num_classes))
    return p


def _pick_block_b(batch_padded, seq, input_size, hidden):
    """Largest sublane-aligned batch block that (a) divides the padded batch,
    (b) fits a conservative per-block VMEM budget (safe under v7x's 64 MiB),
    and (c) leaves >= 2 grid blocks when possible so v7x megacore can shard."""
    # f32 intermediates per (t, b) row: x + mlp0(128) + gx(3H) + mlp1(H)
    row_bytes = 4 * (input_size + 128 + 4 * hidden)
    vmem_rows = (8 << 20) // max(1, row_bytes)          # ~8 MiB intermediate budget
    cap = min(512, max(8, ((vmem_rows // max(1, seq)) // 8) * 8))
    divisors = [b for b in range(8, batch_padded + 1, 8) if batch_padded % b == 0]
    if not divisors:
        return batch_padded
    fits = [b for b in divisors if b <= cap]
    if not fits:
        return divisors[0]
    multi = [b for b in fits if batch_padded // b >= 2]  # nb >= 2 (v7x megacore)
    return max(multi) if multi else max(fits)


def gru_classifier(x, seq_len_vec, params, *, use_bf16=True):
    B, S, I = x.shape
    H = params["whh"].shape[0]
    C = params["wf2"].shape[1]

    # Pad batch to a sublane multiple; padded rows use an out-of-range seq
    # sentinel (selected h stays zero) and are sliced off afterwards.
    B_pad = max(8, ((B + 7) // 8) * 8)
    C_pad = ((C + 127) // 128) * 128                    # lane-dense output width

    x = x.astype(jnp.float32)
    seq = seq_len_vec.astype(jnp.int32)
    if B_pad != B:
        x = jnp.pad(x, ((0, B_pad - B), (0, 0), (0, 0)))
        seq = jnp.pad(seq, (0, B_pad - B), constant_values=S)
    seq = seq.reshape(B_pad, 1)

    block_b = _pick_block_b(B_pad, S, I, H)
    nb = B_pad // block_b
    rows = S * block_b

    # Time-major flatten within each batch block so each timestep's rows are
    # contiguous inside the kernel. Tiny, done once in XLA before the call.
    x_k = (x.reshape(nb, block_b, S, I)
             .transpose(0, 2, 1, 3)
             .reshape(nb * rows, I))

    # bf16 MXU operands (weights pre-cast once); biases stay f32 since they
    # are added to f32 matmul results. Elementwise math in-kernel is f32.
    mdt = jnp.bfloat16 if use_bf16 else jnp.float32
    wf2 = jnp.pad(params["wf2"], ((0, 0), (0, C_pad - C))).astype(mdt)
    bf2 = jnp.pad(params["bf2"], ((0, 0), (0, C_pad - C)))
    weights = (
        params["w1"].astype(mdt), params["b1"],
        params["w2"].astype(mdt), params["b2"],
        params["wih"].astype(mdt), params["bx"],
        params["whh"].astype(mdt), params["bhn"],
        params["wf1"].astype(mdt), params["bf1"],
        wf2, bf2,
    )
    w_specs = [pl.BlockSpec(w.shape, lambda i: (0, 0)) for w in weights]

    out = pl.pallas_call(
        gru_classifier_kernel,
        out_shape=jax.ShapeDtypeStruct((B_pad, C_pad), jnp.float32),
        grid=(nb,),
        in_specs=[pl.BlockSpec((rows, I), lambda i: (i, 0)),       # x (time-major block)
                  pl.BlockSpec((block_b, 1), lambda i: (i, 0))]    # seq gather indices
                 + w_specs,
        out_specs=pl.BlockSpec((block_b, C_pad), lambda i: (i, 0)),
        compiler_params=pltpu.CompilerParams(
            dimension_semantics=("parallel",),                     # megacore on v7x
            vmem_limit_bytes=32 * 1024 * 1024),
    )(x_k, seq, *weights)

    return out[:B, :C]


if __name__ == "__main__":
    B, S, I, H, C = 2, 8, 16, 32, 4  # batch, seq, input_size, hidden_size, num_classes
    key = jax.random.PRNGKey(0)
    kx, kl, kp = jax.random.split(key, 3)

    x = jax.random.normal(kx, (B, S, I), jnp.float32)
    seq_len_vec = jax.random.randint(kl, (B,), 0, S)   # 0-based time index per sample
    params = init_params(kp, I, C, H)

    out = gru_classifier(x, seq_len_vec, params)
    out = jax.block_until_ready(out)
    assert out.shape == (B, C)
    print("KERNEL_OK")
</pallas_src>

<mosaic_0001>
module attributes {stable_mosaic.version = 11 : i64} {
  func.func @gru_classifier_kernel(%arg0: i32, %arg1: memref<64x16xf32, #tpu.memory_space<vmem>>, %arg2: memref<8x1xi32, #tpu.memory_space<vmem>>, %arg3: memref<16x128xbf16, #tpu.memory_space<vmem>>, %arg4: memref<1x128xf32, #tpu.memory_space<vmem>>, %arg5: memref<128x32xbf16, #tpu.memory_space<vmem>>, %arg6: memref<1x32xf32, #tpu.memory_space<vmem>>, %arg7: memref<32x96xbf16, #tpu.memory_space<vmem>>, %arg8: memref<1x96xf32, #tpu.memory_space<vmem>>, %arg9: memref<32x96xbf16, #tpu.memory_space<vmem>>, %arg10: memref<1x32xf32, #tpu.memory_space<vmem>>, %arg11: memref<32x16xbf16, #tpu.memory_space<vmem>>, %arg12: memref<1x16xf32, #tpu.memory_space<vmem>>, %arg13: memref<16x128xbf16, #tpu.memory_space<vmem>>, %arg14: memref<1x128xf32, #tpu.memory_space<vmem>>, %arg15: memref<8x128xf32, #tpu.memory_space<vmem>>) attributes {dimension_semantics = [#tpu.dimension_semantics<parallel>], iteration_bounds = array<i64: 1>, scalar_prefetch = 0 : i64, scratch_operands = 0 : i64, tpu.core_type = #tpu.core_type<tc>, window_params = [{transform_indices = @transform_0, window_bounds = array<i64: 64, 16>}, {transform_indices = @transform_1, window_bounds = array<i64: 8, 1>}, {pipeline_mode = #tpu.pipeline_mode<synchronous>, transform_indices = @transform_2, window_bounds = array<i64: 16, 128>}, {pipeline_mode = #tpu.pipeline_mode<synchronous>, transform_indices = @transform_3, window_bounds = array<i64: 1, 128>}, {pipeline_mode = #tpu.pipeline_mode<synchronous>, transform_indices = @transform_4, window_bounds = array<i64: 128, 32>}, {pipeline_mode = #tpu.pipeline_mode<synchronous>, transform_indices = @transform_5, window_bounds = array<i64: 1, 32>}, {pipeline_mode = #tpu.pipeline_mode<synchronous>, transform_indices = @transform_6, window_bounds = array<i64: 32, 96>}, {pipeline_mode = #tpu.pipeline_mode<synchronous>, transform_indices = @transform_7, window_bounds = array<i64: 1, 96>}, {pipeline_mode = #tpu.pipeline_mode<synchronous>, transform_indices = @transform_8, window_bounds = array<i64: 32, 96>}, {pipeline_mode = #tpu.pipeline_mode<synchronous>, transform_indices = @transform_9, window_bounds = array<i64: 1, 32>}, {pipeline_mode = #tpu.pipeline_mode<synchronous>, transform_indices = @transform_10, window_bounds = array<i64: 32, 16>}, {pipeline_mode = #tpu.pipeline_mode<synchronous>, transform_indices = @transform_11, window_bounds = array<i64: 1, 16>}, {pipeline_mode = #tpu.pipeline_mode<synchronous>, transform_indices = @transform_12, window_bounds = array<i64: 16, 128>}, {pipeline_mode = #tpu.pipeline_mode<synchronous>, transform_indices = @transform_13, window_bounds = array<i64: 1, 128>}, {transform_indices = @transform_14, window_bounds = array<i64: 8, 128>}]} {
    %c0 = arith.constant 0 : index
    %c0_0 = arith.constant 0 : index
    %0 = vector.load %arg1[%c0, %c0_0] : memref<64x16xf32, #tpu.memory_space<vmem>>, vector<64x16xf32>
    %c0_1 = arith.constant 0 : index
    %c0_2 = arith.constant 0 : index
    %1 = vector.load %arg3[%c0_1, %c0_2] : memref<16x128xbf16, #tpu.memory_space<vmem>>, vector<16x128xbf16>
    %2 = arith.truncf %0 : vector<64x16xf32> to vector<64x16xbf16>
    %cst = arith.constant dense<0.000000e+00> : vector<64x128xf32>
    %3 = tpu.matmul %2, %1, %cst {dimension_numbers = #tpu.dot_dimension_numbers<[1], [0], [0], [1], [0, 0, 1, 1], [], []>} : vector<64x16xbf16>, vector<16x128xbf16>, vector<64x128xf32> -> vector<64x128xf32>
    %c0_3 = arith.constant 0 : index
    %c0_4 = arith.constant 0 : index
    %4 = vector.load %arg4[%c0_3, %c0_4] : memref<1x128xf32, #tpu.memory_space<vmem>>, vector<1x128xf32>
    %5 = vector.broadcast %4 : vector<1x128xf32> to vector<64x128xf32>
    %6 = arith.addf %3, %5 : vector<64x128xf32>
    %cst_5 = arith.constant 0.000000e+00 : f32
    %7 = vector.broadcast %cst_5 : f32 to vector<64x128xf32>
    %8 = arith.maximumf %6, %7 : vector<64x128xf32>
    %cst_6 = arith.constant dense<0.000000e+00> : vector<64xf32>
    %9 = vector.multi_reduction <add>, %8, %cst_6 [1] : vector<64x128xf32> to vector<64xf32>
    %10 = vector.shape_cast %9 : vector<64xf32> to vector<64x1xf32>
    %cst_7 = arith.constant 1.280000e+02 : f32
    %11 = vector.broadcast %cst_7 : f32 to vector<64x1xf32>
    %12 = arith.divf %10, %11 : vector<64x1xf32>
    %13 = vector.broadcast %12 : vector<64x1xf32> to vector<64x128xf32>
    %14 = arith.subf %8, %13 : vector<64x128xf32>
    %15 = arith.mulf %14, %14 : vector<64x128xf32>
    %cst_8 = arith.constant dense<0.000000e+00> : vector<64xf32>
    %16 = vector.multi_reduction <add>, %15, %cst_8 [1] : vector<64x128xf32> to vector<64xf32>
    %17 = vector.shape_cast %16 : vector<64xf32> to vector<64x1xf32>
    %cst_9 = arith.constant 1.280000e+02 : f32
    %18 = vector.broadcast %cst_9 : f32 to vector<64x1xf32>
    %19 = arith.divf %17, %18 : vector<64x1xf32>
    %cst_10 = arith.constant 9.99999974E-6 : f32
    %20 = vector.broadcast %cst_10 : f32 to vector<64x1xf32>
    %21 = arith.addf %19, %20 : vector<64x1xf32>
    %22 = math.rsqrt %21 : vector<64x1xf32>
    %23 = vector.broadcast %22 : vector<64x1xf32> to vector<64x128xf32>
    %24 = arith.mulf %14, %23 : vector<64x128xf32>
    %c0_11 = arith.constant 0 : index
    %c0_12 = arith.constant 0 : index
    %25 = vector.load %arg5[%c0_11, %c0_12] : memref<128x32xbf16, #tpu.memory_space<vmem>>, vector<128x32xbf16>
    %26 = arith.truncf %24 : vector<64x128xf32> to vector<64x128xbf16>
    %cst_13 = arith.constant dense<0.000000e+00> : vector<64x32xf32>
    %27 = tpu.matmul %26, %25, %cst_13 {dimension_numbers = #tpu.dot_dimension_numbers<[1], [0], [0], [1], [0, 0, 1, 1], [], []>} : vector<64x128xbf16>, vector<128x32xbf16>, vector<64x32xf32> -> vector<64x32xf32>
    %c0_14 = arith.constant 0 : index
    %c0_15 = arith.constant 0 : index
    %28 = vector.load %arg6[%c0_14, %c0_15] : memref<1x32xf32, #tpu.memory_space<vmem>>, vector<1x32xf32>
    %29 = vector.broadcast %28 : vector<1x32xf32> to vector<64x32xf32>
    %30 = arith.addf %27, %29 : vector<64x32xf32>
    %cst_16 = arith.constant 0.000000e+00 : f32
    %31 = vector.broadcast %cst_16 : f32 to vector<64x32xf32>
    %32 = arith.maximumf %30, %31 : vector<64x32xf32>
    %cst_17 = arith.constant dense<0.000000e+00> : vector<64xf32>
    %33 = vector.multi_reduction <add>, %32, %cst_17 [1] : vector<64x32xf32> to vector<64xf32>
    %34 = vector.shape_cast %33 : vector<64xf32> to vector<64x1xf32>
    %cst_18 = arith.constant 3.200000e+01 : f32
    %35 = vector.broadcast %cst_18 : f32 to vector<64x1xf32>
    %36 = arith.divf %34, %35 : vector<64x1xf32>
    %37 = vector.broadcast %36 : vector<64x1xf32> to vector<64x32xf32>
    %38 = arith.subf %32, %37 : vector<64x32xf32>
    %39 = arith.mulf %38, %38 : vector<64x32xf32>
    %cst_19 = arith.constant dense<0.000000e+00> : vector<64xf32>
    %40 = vector.multi_reduction <add>, %39, %cst_19 [1] : vector<64x32xf32> to vector<64xf32>
    %41 = vector.shape_cast %40 : vector<64xf32> to vector<64x1xf32>
    %cst_20 = arith.constant 3.200000e+01 : f32
    %42 = vector.broadcast %cst_20 : f32 to vector<64x1xf32>
    %43 = arith.divf %41, %42 : vector<64x1xf32>
    %cst_21 = arith.constant 9.99999974E-6 : f32
    %44 = vector.broadcast %cst_21 : f32 to vector<64x1xf32>
    %45 = arith.addf %43, %44 : vector<64x1xf32>
    %46 = math.rsqrt %45 : vector<64x1xf32>
    %47 = vector.broadcast %46 : vector<64x1xf32> to vector<64x32xf32>
    %48 = arith.mulf %38, %47 : vector<64x32xf32>
    %c0_22 = arith.constant 0 : index
    %c0_23 = arith.constant 0 : index
    %49 = vector.load %arg7[%c0_22, %c0_23] : memref<32x96xbf16, #tpu.memory_space<vmem>>, vector<32x96xbf16>
    %50 = arith.truncf %48 : vector<64x32xf32> to vector<64x32xbf16>
    %cst_24 = arith.constant dense<0.000000e+00> : vector<64x96xf32>
    %51 = tpu.matmul %50, %49, %cst_24 {dimension_numbers = #tpu.dot_dimension_numbers<[1], [0], [0], [1], [0, 0, 1, 1], [], []>} : vector<64x32xbf16>, vector<32x96xbf16>, vector<64x96xf32> -> vector<64x96xf32>
    %c0_25 = arith.constant 0 : index
    %c0_26 = arith.constant 0 : index
    %52 = vector.load %arg8[%c0_25, %c0_26] : memref<1x96xf32, #tpu.memory_space<vmem>>, vector<1x96xf32>
    %53 = vector.broadcast %52 : vector<1x96xf32> to vector<64x96xf32>
    %54 = arith.addf %51, %53 : vector<64x96xf32>
    %55 = vector.extract_strided_slice %54 {offsets = [0, 0], sizes = [64, 64], strides = [1, 1]} : vector<64x96xf32> to vector<64x64xf32>
    %56 = vector.extract_strided_slice %54 {offsets = [0, 64], sizes = [64, 32], strides = [1, 1]} : vector<64x96xf32> to vector<64x32xf32>
    %c0_27 = arith.constant 0 : index
    %c0_28 = arith.constant 0 : index
    %57 = vector.load %arg9[%c0_27, %c0_28] : memref<32x96xbf16, #tpu.memory_space<vmem>>, vector<32x96xbf16>
    %c0_29 = arith.constant 0 : index
    %c0_30 = arith.constant 0 : index
    %58 = vector.load %arg10[%c0_29, %c0_30] : memref<1x32xf32, #tpu.memory_space<vmem>>, vector<1x32xf32>
    %59 = vector.shape_cast %58 : vector<1x32xf32> to vector<1x32xf32>
    %60 = vector.broadcast %59 : vector<1x32xf32> to vector<8x32xf32>
    %c0_31 = arith.constant 0 : index
    %c0_32 = arith.constant 0 : index
    %61 = vector.load %arg2[%c0_31, %c0_32] : memref<8x1xi32, #tpu.memory_space<vmem>>, vector<8x1xi32>
    %62 = vector.shape_cast %61 : vector<8x1xi32> to vector<8x1xi32>
    %63 = vector.broadcast %62 : vector<8x1xi32> to vector<8x32xi32>
    %cst_33 = arith.constant 0.000000e+00 : f32
    %64 = vector.broadcast %cst_33 : f32 to vector<8x32xf32>
    %cst_34 = arith.constant 0.000000e+00 : f32
    %65 = vector.broadcast %cst_34 : f32 to vector<8x32xf32>
    %66 = vector.extract_strided_slice %55 {offsets = [0, 0], sizes = [8, 64], strides = [1, 1]} : vector<64x64xf32> to vector<8x64xf32>
    %67 = vector.extract_strided_slice %56 {offsets = [0, 0], sizes = [8, 32], strides = [1, 1]} : vector<64x32xf32> to vector<8x32xf32>
    %68 = arith.truncf %64 : vector<8x32xf32> to vector<8x32xbf16>
    %cst_35 = arith.constant dense<0.000000e+00> : vector<8x96xf32>
    %69 = tpu.matmul %68, %57, %cst_35 {dimension_numbers = #tpu.dot_dimension_numbers<[1], [0], [0], [1], [0, 0, 1, 1], [], []>} : vector<8x32xbf16>, vector<32x96xbf16>, vector<8x96xf32> -> vector<8x96xf32>
    %70 = vector.extract_strided_slice %69 {offsets = [0, 0], sizes = [8, 64], strides = [1, 1]} : vector<8x96xf32> to vector<8x64xf32>
    %71 = arith.addf %66, %70 : vector<8x64xf32>
    %72 = arith.negf %71 : vector<8x64xf32>
    %73 = math.exp %72 : vector<8x64xf32>
    %cst_36 = arith.constant 1.000000e+00 : f32
    %74 = vector.broadcast %cst_36 : f32 to vector<8x64xf32>
    %75 = arith.addf %74, %73 : vector<8x64xf32>
    %76 = arith.divf %74, %75 : vector<8x64xf32>
    %77 = vector.extract_strided_slice %76 {offsets = [0, 0], sizes = [8, 32], strides = [1, 1]} : vector<8x64xf32> to vector<8x32xf32>
    %78 = vector.extract_strided_slice %76 {offsets = [0, 32], sizes = [8, 32], strides = [1, 1]} : vector<8x64xf32> to vector<8x32xf32>
    %79 = vector.extract_strided_slice %69 {offsets = [0, 64], sizes = [8, 32], strides = [1, 1]} : vector<8x96xf32> to vector<8x32xf32>
    %80 = arith.addf %79, %60 : vector<8x32xf32>
    %81 = arith.mulf %77, %80 : vector<8x32xf32>
    %82 = arith.addf %67, %81 : vector<8x32xf32>
    %83 = math.tanh %82 : vector<8x32xf32>
    %cst_37 = arith.constant 1.000000e+00 : f32
    %84 = vector.broadcast %cst_37 : f32 to vector<8x32xf32>
    %85 = arith.subf %84, %78 : vector<8x32xf32>
    %86 = arith.mulf %85, %83 : vector<8x32xf32>
    %87 = arith.mulf %78, %64 : vector<8x32xf32>
    %88 = arith.addf %86, %87 : vector<8x32xf32>
    %c0_i32 = arith.constant 0 : i32
    %89 = vector.broadcast %c0_i32 : i32 to vector<8x32xi32>
    %90 = arith.cmpi eq, %63, %89 : vector<8x32xi32>
    %91 = arith.select %90, %88, %65 : vector<8x32xi1>, vector<8x32xf32>
    %92 = vector.extract_strided_slice %55 {offsets = [8, 0], sizes = [8, 64], strides = [1, 1]} : vector<64x64xf32> to vector<8x64xf32>
    %93 = vector.extract_strided_slice %56 {offsets = [8, 0], sizes = [8, 32], strides = [1, 1]} : vector<64x32xf32> to vector<8x32xf32>
    %94 = arith.truncf %88 : vector<8x32xf32> to vector<8x32xbf16>
    %cst_38 = arith.constant dense<0.000000e+00> : vector<8x96xf32>
    %95 = tpu.matmul %94, %57, %cst_38 {dimension_numbers = #tpu.dot_dimension_numbers<[1], [0], [0], [1], [0, 0, 1, 1], [], []>} : vector<8x32xbf16>, vector<32x96xbf16>, vector<8x96xf32> -> vector<8x96xf32>
    %96 = vector.extract_strided_slice %95 {offsets = [0, 0], sizes = [8, 64], strides = [1, 1]} : vector<8x96xf32> to vector<8x64xf32>
    %97 = arith.addf %92, %96 : vector<8x64xf32>
    %98 = arith.negf %97 : vector<8x64xf32>
    %99 = math.exp %98 : vector<8x64xf32>
    %cst_39 = arith.constant 1.000000e+00 : f32
    %100 = vector.broadcast %cst_39 : f32 to vector<8x64xf32>
    %101 = arith.addf %100, %99 : vector<8x64xf32>
    %102 = arith.divf %100, %101 : vector<8x64xf32>
    %103 = vector.extract_strided_slice %102 {offsets = [0, 0], sizes = [8, 32], strides = [1, 1]} : vector<8x64xf32> to vector<8x32xf32>
    %104 = vector.extract_strided_slice %102 {offsets = [0, 32], sizes = [8, 32], strides = [1, 1]} : vector<8x64xf32> to vector<8x32xf32>
    %105 = vector.extract_strided_slice %95 {offsets = [0, 64], sizes = [8, 32], strides = [1, 1]} : vector<8x96xf32> to vector<8x32xf32>
    %106 = arith.addf %105, %60 : vector<8x32xf32>
    %107 = arith.mulf %103, %106 : vector<8x32xf32>
    %108 = arith.addf %93, %107 : vector<8x32xf32>
    %109 = math.tanh %108 : vector<8x32xf32>
    %cst_40 = arith.constant 1.000000e+00 : f32
    %110 = vector.broadcast %cst_40 : f32 to vector<8x32xf32>
    %111 = arith.subf %110, %104 : vector<8x32xf32>
    %112 = arith.mulf %111, %109 : vector<8x32xf32>
    %113 = arith.mulf %104, %88 : vector<8x32xf32>
    %114 = arith.addf %112, %113 : vector<8x32xf32>
    %c1_i32 = arith.constant 1 : i32
    %115 = vector.broadcast %c1_i32 : i32 to vector<8x32xi32>
    %116 = arith.cmpi eq, %63, %115 : vector<8x32xi32>
    %117 = arith.select %116, %114, %91 : vector<8x32xi1>, vector<8x32xf32>
    %118 = vector.extract_strided_slice %55 {offsets = [16, 0], sizes = [8, 64], strides = [1, 1]} : vector<64x64xf32> to vector<8x64xf32>
    %119 = vector.extract_strided_slice %56 {offsets = [16, 0], sizes = [8, 32], strides = [1, 1]} : vector<64x32xf32> to vector<8x32xf32>
    %120 = arith.truncf %114 : vector<8x32xf32> to vector<8x32xbf16>
    %cst_41 = arith.constant dense<0.000000e+00> : vector<8x96xf32>
    %121 = tpu.matmul %120, %57, %cst_41 {dimension_numbers = #tpu.dot_dimension_numbers<[1], [0], [0], [1], [0, 0, 1, 1], [], []>} : vector<8x32xbf16>, vector<32x96xbf16>, vector<8x96xf32> -> vector<8x96xf32>
    %122 = vector.extract_strided_slice %121 {offsets = [0, 0], sizes = [8, 64], strides = [1, 1]} : vector<8x96xf32> to vector<8x64xf32>
    %123 = arith.addf %118, %122 : vector<8x64xf32>
    %124 = arith.negf %123 : vector<8x64xf32>
    %125 = math.exp %124 : vector<8x64xf32>
    %cst_42 = arith.constant 1.000000e+00 : f32
    %126 = vector.broadcast %cst_42 : f32 to vector<8x64xf32>
    %127 = arith.addf %126, %125 : vector<8x64xf32>
    %128 = arith.divf %126, %127 : vector<8x64xf32>
    %129 = vector.extract_strided_slice %128 {offsets = [0, 0], sizes = [8, 32], strides = [1, 1]} : vector<8x64xf32> to vector<8x32xf32>
    %130 = vector.extract_strided_slice %128 {offsets = [0, 32], sizes = [8, 32], strides = [1, 1]} : vector<8x64xf32> to vector<8x32xf32>
    %131 = vector.extract_strided_slice %121 {offsets = [0, 64], sizes = [8, 32], strides = [1, 1]} : vector<8x96xf32> to vector<8x32xf32>
    %132 = arith.addf %131, %60 : vector<8x32xf32>
    %133 = arith.mulf %129, %132 : vector<8x32xf32>
    %134 = arith.addf %119, %133 : vector<8x32xf32>
    %135 = math.tanh %134 : vector<8x32xf32>
    %cst_43 = arith.constant 1.000000e+00 : f32
    %136 = vector.broadcast %cst_43 : f32 to vector<8x32xf32>
    %137 = arith.subf %136, %130 : vector<8x32xf32>
    %138 = arith.mulf %137, %135 : vector<8x32xf32>
    %139 = arith.mulf %130, %114 : vector<8x32xf32>
    %140 = arith.addf %138, %139 : vector<8x32xf32>
    %c2_i32 = arith.constant 2 : i32
    %141 = vector.broadcast %c2_i32 : i32 to vector<8x32xi32>
    %142 = arith.cmpi eq, %63, %141 : vector<8x32xi32>
    %143 = arith.select %142, %140, %117 : vector<8x32xi1>, vector<8x32xf32>
    %144 = vector.extract_strided_slice %55 {offsets = [24, 0], sizes = [8, 64], strides = [1, 1]} : vector<64x64xf32> to vector<8x64xf32>
    %145 = vector.extract_strided_slice %56 {offsets = [24, 0], sizes = [8, 32], strides = [1, 1]} : vector<64x32xf32> to vector<8x32xf32>
    %146 = arith.truncf %140 : vector<8x32xf32> to vector<8x32xbf16>
    %cst_44 = arith.constant dense<0.000000e+00> : vector<8x96xf32>
    %147 = tpu.matmul %146, %57, %cst_44 {dimension_numbers = #tpu.dot_dimension_numbers<[1], [0], [0], [1], [0, 0, 1, 1], [], []>} : vector<8x32xbf16>, vector<32x96xbf16>, vector<8x96xf32> -> vector<8x96xf32>
    %148 = vector.extract_strided_slice %147 {offsets = [0, 0], sizes = [8, 64], strides = [1, 1]} : vector<8x96xf32> to vector<8x64xf32>
    %149 = arith.addf %144, %148 : vector<8x64xf32>
    %150 = arith.negf %149 : vector<8x64xf32>
    %151 = math.exp %150 : vector<8x64xf32>
    %cst_45 = arith.constant 1.000000e+00 : f32
    %152 = vector.broadcast %cst_45 : f32 to vector<8x64xf32>
    %153 = arith.addf %152, %151 : vector<8x64xf32>
    %154 = arith.divf %152, %153 : vector<8x64xf32>
    %155 = vector.extract_strided_slice %154 {offsets = [0, 0], sizes = [8, 32], strides = [1, 1]} : vector<8x64xf32> to vector<8x32xf32>
    %156 = vector.extract_strided_slice %154 {offsets = [0, 32], sizes = [8, 32], strides = [1, 1]} : vector<8x64xf32> to vector<8x32xf32>
    %157 = vector.extract_strided_slice %147 {offsets = [0, 64], sizes = [8, 32], strides = [1, 1]} : vector<8x96xf32> to vector<8x32xf32>
    %158 = arith.addf %157, %60 : vector<8x32xf32>
    %159 = arith.mulf %155, %158 : vector<8x32xf32>
    %160 = arith.addf %145, %159 : vector<8x32xf32>
    %161 = math.tanh %160 : vector<8x32xf32>
    %cst_46 = arith.constant 1.000000e+00 : f32
    %162 = vector.broadcast %cst_46 : f32 to vector<8x32xf32>
    %163 = arith.subf %162, %156 : vector<8x32xf32>
    %164 = arith.mulf %163, %161 : vector<8x32xf32>
    %165 = arith.mulf %156, %140 : vector<8x32xf32>
    %166 = arith.addf %164, %165 : vector<8x32xf32>
    %c3_i32 = arith.constant 3 : i32
    %167 = vector.broadcast %c3_i32 : i32 to vector<8x32xi32>
    %168 = arith.cmpi eq, %63, %167 : vector<8x32xi32>
    %169 = arith.select %168, %166, %143 : vector<8x32xi1>, vector<8x32xf32>
    %170 = vector.extract_strided_slice %55 {offsets = [32, 0], sizes = [8, 64], strides = [1, 1]} : vector<64x64xf32> to vector<8x64xf32>
    %171 = vector.extract_strided_slice %56 {offsets = [32, 0], sizes = [8, 32], strides = [1, 1]} : vector<64x32xf32> to vector<8x32xf32>
    %172 = arith.truncf %166 : vector<8x32xf32> to vector<8x32xbf16>
    %cst_47 = arith.constant dense<0.000000e+00> : vector<8x96xf32>
    %173 = tpu.matmul %172, %57, %cst_47 {dimension_numbers = #tpu.dot_dimension_numbers<[1], [0], [0], [1], [0, 0, 1, 1], [], []>} : vector<8x32xbf16>, vector<32x96xbf16>, vector<8x96xf32> -> vector<8x96xf32>
    %174 = vector.extract_strided_slice %173 {offsets = [0, 0], sizes = [8, 64], strides = [1, 1]} : vector<8x96xf32> to vector<8x64xf32>
    %175 = arith.addf %170, %174 : vector<8x64xf32>
    %176 = arith.negf %175 : vector<8x64xf32>
    %177 = math.exp %176 : vector<8x64xf32>
    %cst_48 = arith.constant 1.000000e+00 : f32
    %178 = vector.broadcast %cst_48 : f32 to vector<8x64xf32>
    %179 = arith.addf %178, %177 : vector<8x64xf32>
    %180 = arith.divf %178, %179 : vector<8x64xf32>
    %181 = vector.extract_strided_slice %180 {offsets = [0, 0], sizes = [8, 32], strides = [1, 1]} : vector<8x64xf32> to vector<8x32xf32>
    %182 = vector.extract_strided_slice %180 {offsets = [0, 32], sizes = [8, 32], strides = [1, 1]} : vector<8x64xf32> to vector<8x32xf32>
    %183 = vector.extract_strided_slice %173 {offsets = [0, 64], sizes = [8, 32], strides = [1, 1]} : vector<8x96xf32> to vector<8x32xf32>
    %184 = arith.addf %183, %60 : vector<8x32xf32>
    %185 = arith.mulf %181, %184 : vector<8x32xf32>
    %186 = arith.addf %171, %185 : vector<8x32xf32>
    %187 = math.tanh %186 : vector<8x32xf32>
    %cst_49 = arith.constant 1.000000e+00 : f32
    %188 = vector.broadcast %cst_49 : f32 to vector<8x32xf32>
    %189 = arith.subf %188, %182 : vector<8x32xf32>
    %190 = arith.mulf %189, %187 : vector<8x32xf32>
    %191 = arith.mulf %182, %166 : vector<8x32xf32>
    %192 = arith.addf %190, %191 : vector<8x32xf32>
    %c4_i32 = arith.constant 4 : i32
    %193 = vector.broadcast %c4_i32 : i32 to vector<8x32xi32>
    %194 = arith.cmpi eq, %63, %193 : vector<8x32xi32>
    %195 = arith.select %194, %192, %169 : vector<8x32xi1>, vector<8x32xf32>
    %196 = vector.extract_strided_slice %55 {offsets = [40, 0], sizes = [8, 64], strides = [1, 1]} : vector<64x64xf32> to vector<8x64xf32>
    %197 = vector.extract_strided_slice %56 {offsets = [40, 0], sizes = [8, 32], strides = [1, 1]} : vector<64x32xf32> to vector<8x32xf32>
    %198 = arith.truncf %192 : vector<8x32xf32> to vector<8x32xbf16>
    %cst_50 = arith.constant dense<0.000000e+00> : vector<8x96xf32>
    %199 = tpu.matmul %198, %57, %cst_50 {dimension_numbers = #tpu.dot_dimension_numbers<[1], [0], [0], [1], [0, 0, 1, 1], [], []>} : vector<8x32xbf16>, vector<32x96xbf16>, vector<8x96xf32> -> vector<8x96xf32>
    %200 = vector.extract_strided_slice %199 {offsets = [0, 0], sizes = [8, 64], strides = [1, 1]} : vector<8x96xf32> to vector<8x64xf32>
    %201 = arith.addf %196, %200 : vector<8x64xf32>
    %202 = arith.negf %201 : vector<8x64xf32>
    %203 = math.exp %202 : vector<8x64xf32>
    %cst_51 = arith.constant 1.000000e+00 : f32
    %204 = vector.broadcast %cst_51 : f32 to vector<8x64xf32>
    %205 = arith.addf %204, %203 : vector<8x64xf32>
    %206 = arith.divf %204, %205 : vector<8x64xf32>
    %207 = vector.extract_strided_slice %206 {offsets = [0, 0], sizes = [8, 32], strides = [1, 1]} : vector<8x64xf32> to vector<8x32xf32>
    %208 = vector.extract_strided_slice %206 {offsets = [0, 32], sizes = [8, 32], strides = [1, 1]} : vector<8x64xf32> to vector<8x32xf32>
    %209 = vector.extract_strided_slice %199 {offsets = [0, 64], sizes = [8, 32], strides = [1, 1]} : vector<8x96xf32> to vector<8x32xf32>
    %210 = arith.addf %209, %60 : vector<8x32xf32>
    %211 = arith.mulf %207, %210 : vector<8x32xf32>
    %212 = arith.addf %197, %211 : vector<8x32xf32>
    %213 = math.tanh %212 : vector<8x32xf32>
    %cst_52 = arith.constant 1.000000e+00 : f32
    %214 = vector.broadcast %cst_52 : f32 to vector<8x32xf32>
    %215 = arith.subf %214, %208 : vector<8x32xf32>
    %216 = arith.mulf %215, %213 : vector<8x32xf32>
    %217 = arith.mulf %208, %192 : vector<8x32xf32>
    %218 = arith.addf %216, %217 : vector<8x32xf32>
    %c5_i32 = arith.constant 5 : i32
    %219 = vector.broadcast %c5_i32 : i32 to vector<8x32xi32>
    %220 = arith.cmpi eq, %63, %219 : vector<8x32xi32>
    %221 = arith.select %220, %218, %195 : vector<8x32xi1>, vector<8x32xf32>
    %222 = vector.extract_strided_slice %55 {offsets = [48, 0], sizes = [8, 64], strides = [1, 1]} : vector<64x64xf32> to vector<8x64xf32>
    %223 = vector.extract_strided_slice %56 {offsets = [48, 0], sizes = [8, 32], strides = [1, 1]} : vector<64x32xf32> to vector<8x32xf32>
    %224 = arith.truncf %218 : vector<8x32xf32> to vector<8x32xbf16>
    %cst_53 = arith.constant dense<0.000000e+00> : vector<8x96xf32>
    %225 = tpu.matmul %224, %57, %cst_53 {dimension_numbers = #tpu.dot_dimension_numbers<[1], [0], [0], [1], [0, 0, 1, 1], [], []>} : vector<8x32xbf16>, vector<32x96xbf16>, vector<8x96xf32> -> vector<8x96xf32>
    %226 = vector.extract_strided_slice %225 {offsets = [0, 0], sizes = [8, 64], strides = [1, 1]} : vector<8x96xf32> to vector<8x64xf32>
    %227 = arith.addf %222, %226 : vector<8x64xf32>
    %228 = arith.negf %227 : vector<8x64xf32>
    %229 = math.exp %228 : vector<8x64xf32>
    %cst_54 = arith.constant 1.000000e+00 : f32
    %230 = vector.broadcast %cst_54 : f32 to vector<8x64xf32>
    %231 = arith.addf %230, %229 : vector<8x64xf32>
    %232 = arith.divf %230, %231 : vector<8x64xf32>
    %233 = vector.extract_strided_slice %232 {offsets = [0, 0], sizes = [8, 32], strides = [1, 1]} : vector<8x64xf32> to vector<8x32xf32>
    %234 = vector.extract_strided_slice %232 {offsets = [0, 32], sizes = [8, 32], strides = [1, 1]} : vector<8x64xf32> to vector<8x32xf32>
    %235 = vector.extract_strided_slice %225 {offsets = [0, 64], sizes = [8, 32], strides = [1, 1]} : vector<8x96xf32> to vector<8x32xf32>
    %236 = arith.addf %235, %60 : vector<8x32xf32>
    %237 = arith.mulf %233, %236 : vector<8x32xf32>
    %238 = arith.addf %223, %237 : vector<8x32xf32>
    %239 = math.tanh %238 : vector<8x32xf32>
    %cst_55 = arith.constant 1.000000e+00 : f32
    %240 = vector.broadcast %cst_55 : f32 to vector<8x32xf32>
    %241 = arith.subf %240, %234 : vector<8x32xf32>
    %242 = arith.mulf %241, %239 : vector<8x32xf32>
    %243 = arith.mulf %234, %218 : vector<8x32xf32>
    %244 = arith.addf %242, %243 : vector<8x32xf32>
    %c6_i32 = arith.constant 6 : i32
    %245 = vector.broadcast %c6_i32 : i32 to vector<8x32xi32>
    %246 = arith.cmpi eq, %63, %245 : vector<8x32xi32>
    %247 = arith.select %246, %244, %221 : vector<8x32xi1>, vector<8x32xf32>
    %248 = vector.extract_strided_slice %55 {offsets = [56, 0], sizes = [8, 64], strides = [1, 1]} : vector<64x64xf32> to vector<8x64xf32>
    %249 = vector.extract_strided_slice %56 {offsets = [56, 0], sizes = [8, 32], strides = [1, 1]} : vector<64x32xf32> to vector<8x32xf32>
    %250 = arith.truncf %244 : vector<8x32xf32> to vector<8x32xbf16>
    %cst_56 = arith.constant dense<0.000000e+00> : vector<8x96xf32>
    %251 = tpu.matmul %250, %57, %cst_56 {dimension_numbers = #tpu.dot_dimension_numbers<[1], [0], [0], [1], [0, 0, 1, 1], [], []>} : vector<8x32xbf16>, vector<32x96xbf16>, vector<8x96xf32> -> vector<8x96xf32>
    %252 = vector.extract_strided_slice %251 {offsets = [0, 0], sizes = [8, 64], strides = [1, 1]} : vector<8x96xf32> to vector<8x64xf32>
    %253 = arith.addf %248, %252 : vector<8x64xf32>
    %254 = arith.negf %253 : vector<8x64xf32>
    %255 = math.exp %254 : vector<8x64xf32>
    %cst_57 = arith.constant 1.000000e+00 : f32
    %256 = vector.broadcast %cst_57 : f32 to vector<8x64xf32>
    %257 = arith.addf %256, %255 : vector<8x64xf32>
    %258 = arith.divf %256, %257 : vector<8x64xf32>
    %259 = vector.extract_strided_slice %258 {offsets = [0, 0], sizes = [8, 32], strides = [1, 1]} : vector<8x64xf32> to vector<8x32xf32>
    %260 = vector.extract_strided_slice %258 {offsets = [0, 32], sizes = [8, 32], strides = [1, 1]} : vector<8x64xf32> to vector<8x32xf32>
    %261 = vector.extract_strided_slice %251 {offsets = [0, 64], sizes = [8, 32], strides = [1, 1]} : vector<8x96xf32> to vector<8x32xf32>
    %262 = arith.addf %261, %60 : vector<8x32xf32>
    %263 = arith.mulf %259, %262 : vector<8x32xf32>
    %264 = arith.addf %249, %263 : vector<8x32xf32>
    %265 = math.tanh %264 : vector<8x32xf32>
    %cst_58 = arith.constant 1.000000e+00 : f32
    %266 = vector.broadcast %cst_58 : f32 to vector<8x32xf32>
    %267 = arith.subf %266, %260 : vector<8x32xf32>
    %268 = arith.mulf %267, %265 : vector<8x32xf32>
    %269 = arith.mulf %260, %244 : vector<8x32xf32>
    %270 = arith.addf %268, %269 : vector<8x32xf32>
    %c7_i32 = arith.constant 7 : i32
    %271 = vector.broadcast %c7_i32 : i32 to vector<8x32xi32>
    %272 = arith.cmpi eq, %63, %271 : vector<8x32xi32>
    %273 = arith.select %272, %270, %247 : vector<8x32xi1>, vector<8x32xf32>
    %c0_59 = arith.constant 0 : index
    %c0_60 = arith.constant 0 : index
    %274 = vector.load %arg11[%c0_59, %c0_60] : memref<32x16xbf16, #tpu.memory_space<vmem>>, vector<32x16xbf16>
    %275 = arith.truncf %273 : vector<8x32xf32> to vector<8x32xbf16>
    %cst_61 = arith.constant dense<0.000000e+00> : vector<8x16xf32>
    %276 = tpu.matmul %275, %274, %cst_61 {dimension_numbers = #tpu.dot_dimension_numbers<[1], [0], [0], [1], [0, 0, 1, 1], [], []>} : vector<8x32xbf16>, vector<32x16xbf16>, vector<8x16xf32> -> vector<8x16xf32>
    %c0_62 = arith.constant 0 : index
    %c0_63 = arith.constant 0 : index
    %277 = vector.load %arg12[%c0_62, %c0_63] : memref<1x16xf32, #tpu.memory_space<vmem>>, vector<1x16xf32>
    %278 = vector.broadcast %277 : vector<1x16xf32> to vector<8x16xf32>
    %279 = arith.addf %276, %278 : vector<8x16xf32>
    %cst_64 = arith.constant 0.000000e+00 : f32
    %280 = vector.broadcast %cst_64 : f32 to vector<8x16xf32>
    %281 = arith.maximumf %279, %280 : vector<8x16xf32>
    %cst_65 = arith.constant dense<0.000000e+00> : vector<8xf32>
    %282 = vector.multi_reduction <add>, %281, %cst_65 [1] : vector<8x16xf32> to vector<8xf32>
    %283 = vector.shape_cast %282 : vector<8xf32> to vector<8x1xf32>
    %cst_66 = arith.constant 1.600000e+01 : f32
    %284 = vector.broadcast %cst_66 : f32 to vector<8x1xf32>
    %285 = arith.divf %283, %284 : vector<8x1xf32>
    %286 = vector.broadcast %285 : vector<8x1xf32> to vector<8x16xf32>
    %287 = arith.subf %281, %286 : vector<8x16xf32>
    %288 = arith.mulf %287, %287 : vector<8x16xf32>
    %cst_67 = arith.constant dense<0.000000e+00> : vector<8xf32>
    %289 = vector.multi_reduction <add>, %288, %cst_67 [1] : vector<8x16xf32> to vector<8xf32>
    %290 = vector.shape_cast %289 : vector<8xf32> to vector<8x1xf32>
    %cst_68 = arith.constant 1.600000e+01 : f32
    %291 = vector.broadcast %cst_68 : f32 to vector<8x1xf32>
    %292 = arith.divf %290, %291 : vector<8x1xf32>
    %cst_69 = arith.constant 9.99999974E-6 : f32
    %293 = vector.broadcast %cst_69 : f32 to vector<8x1xf32>
    %294 = arith.addf %292, %293 : vector<8x1xf32>
    %295 = math.rsqrt %294 : vector<8x1xf32>
    %296 = vector.broadcast %295 : vector<8x1xf32> to vector<8x16xf32>
    %297 = arith.mulf %287, %296 : vector<8x16xf32>
    %c0_70 = arith.constant 0 : index
    %c0_71 = arith.constant 0 : index
    %298 = vector.load %arg13[%c0_70, %c0_71] : memref<16x128xbf16, #tpu.memory_space<vmem>>, vector<16x128xbf16>
    %299 = arith.truncf %297 : vector<8x16xf32> to vector<8x16xbf16>
    %cst_72 = arith.constant dense<0.000000e+00> : vector<8x128xf32>
    %300 = tpu.matmul %299, %298, %cst_72 {dimension_numbers = #tpu.dot_dimension_numbers<[1], [0], [0], [1], [0, 0, 1, 1], [], []>} : vector<8x16xbf16>, vector<16x128xbf16>, vector<8x128xf32> -> vector<8x128xf32>
    %c0_73 = arith.constant 0 : index
    %c0_74 = arith.constant 0 : index
    %301 = vector.load %arg14[%c0_73, %c0_74] : memref<1x128xf32, #tpu.memory_space<vmem>>, vector<1x128xf32>
    %302 = vector.broadcast %301 : vector<1x128xf32> to vector<8x128xf32>
    %303 = arith.addf %300, %302 : vector<8x128xf32>
    %c0_75 = arith.constant 0 : index
    %c0_76 = arith.constant 0 : index
    %304 = vector.load %arg15[%c0_75, %c0_76] : memref<8x128xf32, #tpu.memory_space<vmem>>, vector<8x128xf32>
    tpu.vector_store %arg15[%c0_75, %c0_76], %303 {strides = array<i32>} : memref<8x128xf32, #tpu.memory_space<vmem>>, vector<8x128xf32>,
    return
  }
  func.func @transform_0(%arg0: i32) -> (i32, i32) {
    %c0_i32 = arith.constant 0 : i32
    %c0_i32_0 = arith.constant 0 : i32
    return %arg0, %c0_i32 : i32, i32
  }
  func.func @transform_1(%arg0: i32) -> (i32, i32) {
    %c0_i32 = arith.constant 0 : i32
    %c0_i32_0 = arith.constant 0 : i32
    return %arg0, %c0_i32 : i32, i32
  }
  func.func @transform_2(%arg0: i32) -> (i32, i32) {
    %c0_i32 = arith.constant 0 : i32
    %c0_i32_0 = arith.constant 0 : i32
    %c0_i32_1 = arith.constant 0 : i32
    return %c0_i32, %c0_i32_0 : i32, i32
  }
  func.func @transform_3(%arg0: i32) -> (i32, i32) {
    %c0_i32 = arith.constant 0 : i32
    %c0_i32_0 = arith.constant 0 : i32
    %c0_i32_1 = arith.constant 0 : i32
    return %c0_i32, %c0_i32_0 : i32, i32
  }
  func.func @transform_4(%arg0: i32) -> (i32, i32) {
    %c0_i32 = arith.constant 0 : i32
    %c0_i32_0 = arith.constant 0 : i32
    %c0_i32_1 = arith.constant 0 : i32
    return %c0_i32, %c0_i32_0 : i32, i32
  }
  func.func @transform_5(%arg0: i32) -> (i32, i32) {
    %c0_i32 = arith.constant 0 : i32
    %c0_i32_0 = arith.constant 0 : i32
    %c0_i32_1 = arith.constant 0 : i32
    return %c0_i32, %c0_i32_0 : i32, i32
  }
  func.func @transform_6(%arg0: i32) -> (i32, i32) {
    %c0_i32 = arith.constant 0 : i32
    %c0_i32_0 = arith.constant 0 : i32
    %c0_i32_1 = arith.constant 0 : i32
    return %c0_i32, %c0_i32_0 : i32, i32
  }
  func.func @transform_7(%arg0: i32) -> (i32, i32) {
    %c0_i32 = arith.constant 0 : i32
    %c0_i32_0 = arith.constant 0 : i32
    %c0_i32_1 = arith.constant 0 : i32
    return %c0_i32, %c0_i32_0 : i32, i32
  }
  func.func @transform_8(%arg0: i32) -> (i32, i32) {
    %c0_i32 = arith.constant 0 : i32
    %c0_i32_0 = arith.constant 0 : i32
    %c0_i32_1 = arith.constant 0 : i32
    return %c0_i32, %c0_i32_0 : i32, i32
  }
  func.func @transform_9(%arg0: i32) -> (i32, i32) {
    %c0_i32 = arith.constant 0 : i32
    %c0_i32_0 = arith.constant 0 : i32
    %c0_i32_1 = arith.constant 0 : i32
    return %c0_i32, %c0_i32_0 : i32, i32
  }
  func.func @transform_10(%arg0: i32) -> (i32, i32) {
    %c0_i32 = arith.constant 0 : i32
    %c0_i32_0 = arith.constant 0 : i32
    %c0_i32_1 = arith.constant 0 : i32
    return %c0_i32, %c0_i32_0 : i32, i32
  }
  func.func @transform_11(%arg0: i32) -> (i32, i32) {
    %c0_i32 = arith.constant 0 : i32
    %c0_i32_0 = arith.constant 0 : i32
    %c0_i32_1 = arith.constant 0 : i32
    return %c0_i32, %c0_i32_0 : i32, i32
  }
  func.func @transform_12(%arg0: i32) -> (i32, i32) {
    %c0_i32 = arith.constant 0 : i32
    %c0_i32_0 = arith.constant 0 : i32
    %c0_i32_1 = arith.constant 0 : i32
    return %c0_i32, %c0_i32_0 : i32, i32
  }
  func.func @transform_13(%arg0: i32) -> (i32, i32) {
    %c0_i32 = arith.constant 0 : i32
    %c0_i32_0 = arith.constant 0 : i32
    %c0_i32_1 = arith.constant 0 : i32
    return %c0_i32, %c0_i32_0 : i32, i32
  }
  func.func @transform_14(%arg0: i32) -> (i32, i32) {
    %c0_i32 = arith.constant 0 : i32
    %c0_i32_0 = arith.constant 0 : i32
    return %arg0, %c0_i32 : i32, i32
  }
}

</mosaic_0001>

<bundles_post_ra>
// kernel: tpu_custom_call.1
= control target key start
LH: loop header
LB: loop body
LE: loop exit
PB: predicated region body
PF: predicated region fallthrough
CT: control target
= control target key end

     0   :  { %vm76_vm0 = vcmask 130048   ;;  %s2213_s0 = inlined_call_operand.vmem [shape: f32[64,16], index: 0, kind: input, shape index: {}]   ;;  %s2214_s1 = inlined_call_operand.vmem [shape: s32[8,1], index: 1, kind: input, shape index: {}]   ;;  %s2215_s2 = inlined_call_operand.vmem [shape: bf16[16,128], index: 2, kind: input, shape index: {}]   ;;  %s2216_s3 = inlined_call_operand.vmem [shape: f32[1,128], index: 3, kind: input, shape index: {}]   ;;  %s2217_s4 = inlined_call_operand.vmem [shape: bf16[128,32], index: 4, kind: input, shape index: {}]   ;;  %s2218_s5 = inlined_call_operand.vmem [shape: f32[1,32], index: 5, kind: input, shape index: {}]   ;;  %s2219_s6 = inlined_call_operand.vmem [shape: bf16[32,96], index: 6, kind: input, shape index: {}]   ;;  %s2220_s7 = inlined_call_operand.vmem [shape: f32[1,96], index: 7, kind: input, shape index: {}]   ;;  %s2221_s8 = inlined_call_operand.vmem [shape: bf16[32,96], index: 8, kind: input, shape index: {}]   ;;  %s2222_s9 = inlined_call_operand.vmem [shape: f32[1,32], index: 9, kind: input, shape index: {}]   ;;  %s2223_s10 = inlined_call_operand.vmem [shape: bf16[32,16], index: 10, kind: input, shape index: {}]   ;;  %s2224_s11 = inlined_call_operand.vmem [shape: f32[1,16], index: 11, kind: input, shape index: {}]   ;;  %s2225_s12 = inlined_call_operand.vmem [shape: bf16[16,128], index: 12, kind: input, shape index: {}]   ;;  %s2226_s13 = inlined_call_operand.vmem [shape: f32[1,128], index: 13, kind: input, shape index: {}]   ;;  %s2227_s14 = inlined_call_operand.hbm [shape: f32[8,128], index: 14, kind: output, shape index: {}]  }
   0x1   :  { %v1632_v0 = vld [vmem:[%s2215_s2] sm:$0xff]   ;;  %v50_v2 = vld [vmem:[%s2213_s0 + $0x8] sm:$0xff]  ;;  %v51_v3 = vld [vmem:[%s2213_s0 + $0x10] sm:$0xff] }
   0x2   :  { %v49_v1 = vld [vmem:[%s2213_s0] sm:$0xff]  ;;  %1500 = vmatprep.subr.bf16.mxu0 %v1632_v0  ;;  %v52_v5 = vld [vmem:[%s2213_s0 + $0x18] sm:$0xff]  ;;  %v54_v7 = vld [vmem:[%s2213_s0 + $0x28] sm:$0xff] }
   0x3   :  { %v59_v4 = vpack.c.bf16 %v50_v2, %v49_v1  ;;  %v53_v6 = vld [vmem:[%s2213_s0 + $0x20] sm:$0xff]  ;;  %1501 = vmatpush3.bf16.msra.mxu0 %v1632_v0  ;;  %v60_v8 = vpack.c.bf16 %v52_v5, %v51_v3  ;;  %v55_v10 = vld [vmem:[%s2213_s0 + $0x30] sm:$0xff]  ;;  %v56_v11 = vld [vmem:[%s2213_s0 + $0x38] sm:$0xff] }
   0x4   :  { %v61_v9 = vpack.c.bf16 %v54_v7, %v53_v6  ;;  %v62_v12 = vpack.c.bf16 %v56_v11, %v55_v10 }
   0x5   :  { %1502 = vmatprep.mubr.msk.bf16.mxu0 %vm76_vm0, %v59_v4 }
   0x6   :  { %1503 = vmatmul.mubr.msk.bf16.vlgmr.msra.gmra.mxu0 %vm76_vm0, %v60_v8 }
   0x7   :  { %1506 = vmatprep.mubr.msk.bf16.mxu0 %vm76_vm0, %v61_v9 }
   0x8   :  { %19 = vsyncpa [#allocation3], 0  ;;  %v1401_v13 = vld [vmem:[%s2216_s3] ss:$0 sm:$0xff]  ;;  %v1633_v38 = vld [vmem:[%s2217_s4 + $0x38] sm:$0xff]   ;;  %vm399_vm1 = vcmask 261120  }
   0x9   :  { %1510 = vmatprep.subr.bf16.mxu1 %v1633_v38  ;;  %v1634_v5 = vld [vmem:[%s2217_s4 + $0x30] sm:$0xff]   ;;  %v1635_v8 = vld [vmem:[%s2217_s4 + $0x28] sm:$0xff]   ;;  %v1636_v9 = vld [vmem:[%s2217_s4 + $0x20] sm:$0xff]   ;;  %vm1753_vm2 = vmmov 0   ;;  %s1755_s20 = smov 64  }
   0xa   :  { %1511 = vmatpush3.bf16.msra.mxu1 %v1633_v38  ;;  %v1637_v10 = vld [vmem:[%s2217_s4 + $0x18] sm:$0xff]   ;;  %v1638_v11 = vld [vmem:[%s2217_s4 + $0x10] sm:$0xff]  }
   0xb   :  { %1512 = vmatprep.subr.bf16.mxu1 %v1634_v5 }
   0xe   :  { %1507 = vmatmul.mubr.msk.bf16.gmra.mxu0 %vm76_vm0, %v62_v12  ;;  %1513 = vmatpush3.bf16.msra.mxu1 %v1634_v5  ;;  %v1639_v12 = vld [vmem:[%s2217_s4 + $0x8] sm:$0xff]  }
   0xf   :  { %1514 = vmatprep.subr.bf16.mxu1 %v1635_v8 }
  0x12   :  { %1515 = vmatpush3.bf16.msra.mxu1 %v1635_v8 }
  0x13   :  { %1516 = vmatprep.subr.bf16.mxu1 %v1636_v9 }
  0x16   :  { %1517 = vmatpush3.bf16.msra.mxu1 %v1636_v9 }
  0x17   :  { %1518 = vmatprep.subr.bf16.mxu1 %v1637_v10 }
  0x1a   :  { %1519 = vmatpush3.bf16.msra.mxu1 %v1637_v10 }
  0x1b   :  { %1520 = vmatprep.subr.bf16.mxu1 %v1638_v11 }
  0x1e   :  { %1521 = vmatpush3.bf16.msra.mxu1 %v1638_v11 }
  0x1f   :  { %1522 = vmatprep.subr.bf16.mxu1 %v1639_v12 }
  0x22   :  { %1523 = vmatpush3.bf16.msra.mxu1 %v1639_v12 }
  0xc6   :  { %v1504_v14 = vpop.f32.mrf.mxu0 }
  0xc7   :  { %v132_v15 = vadd.f32 %v1504_v14, %v1401_v13 }
  0xc8   :  { %v123_v16 = vpop.f32.mrf.mxu0 }
  0xc9   :  { %v156_v17 = vmax.f32 %v132_v15, 0.0  ;;  %v124_v18 = vadd.f32 %v1401_v13, %v123_v16 }
  0xca   :  { %v1505_v19 = vpop.f32.mrf.mxu0 }
  0xcb   :  { %v154_v20 = vmax.f32 %v124_v18, 0.0  ;;  %v135_v21 = vadd.f32 %v1505_v19, %v1401_v13  ;;  %166 = vadd.xlane.f32.xlu1 %v156_v17 }
  0xcc   :  { %v126_v22 = vpop.f32.mrf.mxu0 }
  0xcd   :  { %v157_v23 = vmax.f32 %v135_v21, 0.0  ;;  %v127_v24 = vadd.f32 %v1401_v13, %v126_v22  ;;  %162 = vadd.xlane.f32.xlu0 %v154_v20 }
  0xce   :  { %v1508_v25 = vpop.f32.mrf.mxu0 }
  0xcf   :  { %v155_v26 = vmax.f32 %v127_v24, 0.0  ;;  %168 = vadd.xlane.f32.xlu1 %v157_v23  ;;  %v148_v30 = vadd.f32 %v1508_v25, %v1401_v13 }
  0xd0   :  { %v139_v27 = vpop.f32.mrf.mxu0 }
  0xd1   :  { %v140_v28 = vadd.f32 %v1401_v13, %v139_v27  ;;  %164 = vadd.xlane.f32.xlu0 %v155_v26  ;;  %v160_v34 = vmax.f32 %v148_v30, 0.0 }
  0xd2   :  { %v1509_v29 = vpop.f32.mrf.mxu0 }
  0xd3   :  { %v158_v31 = vmax.f32 %v140_v28, 0.0  ;;  %v151_v35 = vadd.f32 %v1509_v29, %v1401_v13 }
  0xd4   :  { %v142_v32 = vpop.f32.mrf.mxu0 }
  0xd5   :  { %v143_v33 = vadd.f32 %v1401_v13, %v142_v32  ;;  %170 = vadd.xlane.f32.xlu0 %v158_v31  ;;  %v161_v37 = vmax.f32 %v151_v35, 0.0  ;;  %v1640_v13 = vld [vmem:[%s2217_s4] sm:$0xff]   ;;  %s1757_s4 = smov [#allocation2]  }
  0xd6   :  { %1524 = vmatprep.subr.bf16.mxu1 %v1640_v13  ;;  %s1393_s29 = sshll.u32 %s1757_s4, 4  ;;  %s1394_s29 = int_to_ptr.vmem [resolvable:$true] %s1393_s29 }
  0xd7   :  { %v159_v36 = vmax.f32 %v143_v33, 0.0  ;;  %1525 = vmatpush3.bf16.msra.mxu1 %v1640_v13  ;;  %p1735_p1 = scmp.lt.s32.totalorder %s1394_s29, %s1394_s29 }
  0xd9   :  { %172 = vadd.xlane.f32.xlu1 %v159_v36  ;;  %174 = vadd.xlane.f32.xlu0 %v160_v34 }
  0xdd   :  { %176 = vadd.xlane.f32.xlu1 %v161_v37 }
 0x154   :  { %v167_v39 = vpop.xlane.xlu1 %166 }
 0x155   :  { %v181_v41 = vmul.f32 0.0078125, %v167_v39 }
 0x156   :  { %v163_v40 = vpop.xlane.xlu0 %162 }
 0x157   :  { %v179_v42 = vmul.f32 0.0078125, %v163_v40  ;;  %v1872_v46 = vsub.f32 %v156_v17, %v181_v41 }
 0x158   :  { %v169_v43 = vpop.xlane.xlu1 %168 }
 0x159   :  { %v1870_v44 = vsub.f32 %v154_v20, %v179_v42  ;;  %v182_v47 = vmul.f32 0.0078125, %v169_v43  ;;  %v197_v54 = vmul.f32 %v1872_v46, %v1872_v46 }
 0x15a   :  { %v165_v45 = vpop.xlane.xlu0 %164 }
 0x15b   :  { %v180_v48 = vmul.f32 0.0078125, %v165_v45  ;;  %v195_v49 = vmul.f32 %v1870_v44, %v1870_v44  ;;  %v1878_v52 = vsub.f32 %v157_v23, %v182_v47 }
 0x15d   :  { %v1876_v50 = vsub.f32 %v155_v26, %v180_v48  ;;  %203 = vadd.xlane.f32.xlu0 %v195_v49  ;;  %v198_v61 = vmul.f32 %v1878_v52, %v1878_v52 }
 0x15e   :  { %v171_v51 = vpop.xlane.xlu0 %170 }
 0x15f   :  { %v183_v53 = vmul.f32 0.0078125, %v171_v51  ;;  %v196_v55 = vmul.f32 %v1876_v50, %v1876_v50 }
 0x161   :  { %v1884_v56 = vsub.f32 %v158_v31, %v183_v53  ;;  %207 = vadd.xlane.f32.xlu0 %v197_v54  ;;  %205 = vadd.xlane.f32.xlu1 %v196_v55 }
 0x162   :  { %v173_v57 = vpop.xlane.xlu1 %172  ;;  %v175_v58 = vpop.xlane.xlu0 %174 }
 0x163   :  { %v184_v59 = vmul.f32 0.0078125, %v173_v57  ;;  %v185_v60 = vmul.f32 0.0078125, %v175_v58  ;;  %v199_v62 = vmul.f32 %v1884_v56, %v1884_v56 }
 0x165   :  { %v1890_v63 = vsub.f32 %v159_v36, %v184_v59  ;;  %v1892_v0 = vsub.f32 %v160_v34, %v185_v60  ;;  %209 = vadd.xlane.f32.xlu1 %v198_v61  ;;  %211 = vadd.xlane.f32.xlu0 %v199_v62 }
 0x166   :  { %v177_v1 = vpop.xlane.xlu1 %176 }
 0x167   :  { %v186_v2 = vmul.f32 0.0078125, %v177_v1  ;;  %v200_v3 = vmul.f32 %v1890_v63, %v1890_v63  ;;  %v201_v4 = vmul.f32 %v1892_v0, %v1892_v0 }
 0x169   :  { %v1901_v6 = vsub.f32 %v161_v37, %v186_v2  ;;  %213 = vadd.xlane.f32.xlu1 %v200_v3  ;;  %215 = vadd.xlane.f32.xlu0 %v201_v4 }
 0x16b   :  { %v202_v7 = vmul.f32 %v1901_v6, %v1901_v6 }
 0x16d   :  { %217 = vadd.xlane.f32.xlu1 %v202_v7 }
 0x1e6   :  { %v204_v14 = vpop.xlane.xlu0 %203 }
 0x1e7   :  { %v219_v15 = vmul.f32 0.0078125, %v204_v14 }
 0x1e9   :  { %v227_v16 = vadd.f32 1e-05, %v219_v15 }
 0x1ea   :  { %v206_v17 = vpop.xlane.xlu1 %205  ;;  %v208_v18 = vpop.xlane.xlu0 %207 }
 0x1eb   :  { %v220_v19 = vmul.f32 0.0078125, %v206_v17  ;;  %v221_v20 = vmul.f32 0.0078125, %v208_v18  ;;  %1648 = vrsqrt.f32 %v227_v16 }
 0x1ed   :  { %v228_v21 = vadd.f32 1e-05, %v220_v19  ;;  %v229_v22 = vadd.f32 1e-05, %v221_v20 }
 0x1ee   :  { %v210_v23 = vpop.xlane.xlu1 %209  ;;  %v212_v24 = vpop.xlane.xlu0 %211 }
 0x1ef   :  { %1650 = vrsqrt.f32 %v228_v21  ;;  %v222_v25 = vmul.f32 0.0078125, %v210_v23  ;;  %v223_v26 = vmul.f32 0.0078125, %v212_v24 }
 0x1f0   :  { %1652 = vrsqrt.f32 %v229_v22 }
 0x1f1   :  { %v230_v27 = vadd.f32 1e-05, %v222_v25  ;;  %v231_v28 = vadd.f32 1e-05, %v223_v26 }
 0x1f2   :  { %v214_v29 = vpop.xlane.xlu1 %213  ;;  %v216_v30 = vpop.xlane.xlu0 %215 }
 0x1f3   :  { %1654 = vrsqrt.f32 %v230_v27  ;;  %v224_v31 = vmul.f32 0.0078125, %v214_v29  ;;  %v225_v32 = vmul.f32 0.0078125, %v216_v30 }
 0x1f4   :  { %1656 = vrsqrt.f32 %v231_v28 }
 0x1f5   :  { %v232_v33 = vadd.f32 1e-05, %v224_v31  ;;  %v233_v34 = vadd.f32 1e-05, %v225_v32 }
 0x1f6   :  { %v218_v35 = vpop.xlane.xlu1 %217 }
 0x1f7   :  { %1658 = vrsqrt.f32 %v232_v33  ;;  %v226_v36 = vmul.f32 0.0078125, %v218_v35 }
 0x1f8   :  { %1660 = vrsqrt.f32 %v233_v34  ;;  %v1649_v38 = vpop.eup %1648 }
 0x1f9   :  { %v234_v37 = vadd.f32 1e-05, %v226_v36  ;;  %v243_v40 = vmul.f32 %v1649_v38, %v1870_v44 }
 0x1fb   :  { %1662 = vrsqrt.f32 %v234_v37 }
 0x1fc   :  { %v1651_v39 = vpop.eup %1650 }
 0x1fd   :  { %v244_v41 = vmul.f32 %v1651_v39, %v1876_v50  ;;  %v1653_v42 = vpop.eup %1652 }
 0x1fe   :  { %v245_v47 = vmul.f32 %v1653_v42, %v1872_v46 }
 0x1ff   :  { %v267_v43 = vpack.c.bf16 %v244_v41, %v243_v40 }
 0x200   :  { %v1655_v45 = vpop.eup %1654 }
 0x201   :  { %1526 = vmatprep.mubr.bf16.mxu1 %v267_v43  ;;  %v246_v48 = vmul.f32 %v1655_v45, %v1878_v52  ;;  %v1657_v49 = vpop.eup %1656  ;;  %v1407_v52 = vld [vmem:[%s2218_s5] ss:$0 sm:$0xff] }
 0x202   :  { %v247_v54 = vmul.f32 %v1657_v49, %v1884_v56 }
 0x203   :  { %v268_v51 = vpack.c.bf16 %v246_v48, %v245_v47 }
 0x204   :  { %v1659_v53 = vpop.eup %1658 }
 0x205   :  { %1527 = vmatmul.mubr.bf16.vlgmr.msra.gmra.mxu1 %v268_v51  ;;  %v248_v55 = vmul.f32 %v1659_v53, %v1890_v63  ;;  %v1661_v57 = vpop.eup %1660 }
 0x206   :  { %v249_v50 = vmul.f32 %v1661_v57, %v1892_v0 }
 0x207   :  { %v269_v44 = vpack.c.bf16 %v248_v55, %v247_v54 }
 0x208   :  { %v1663_v58 = vpop.eup %1662 }
 0x209   :  { %1530 = vmatprep.mubr.bf16.mxu1 %v269_v44  ;;  %v250_v59 = vmul.f32 %v1663_v58, %v1901_v6 }
 0x20b   :  { %v270_v60 = vpack.c.bf16 %v250_v59, %v249_v50 }
 0x20d   :  { %1531 = vmatmul.mubr.bf16.gmra.mxu1 %v270_v60 }
 0x2c5   :  { %v1528_v46 = vpop.f32.mrf.mxu1 }
 0x2c6   :  { %v369_v62 = vadd.f32 %v1528_v46, %v1407_v52 }
 0x2c7   :  { %v360_v61 = vpop.f32.mrf.mxu1 }
 0x2c8   :  { %v361_v56 = vadd.f32 %v1407_v52, %v360_v61  ;;  %v393_v4 = vmax.f32 %v369_v62, 0.0 }
 0x2c9   :  { %v1529_v1 = vpop.f32.mrf.mxu1 }
 0x2ca   :  { %v391_v63 = vmax.f32 %v361_v56, 0.0  ;;  %v372_v2 = vadd.f32 %v1529_v1, %v1407_v52  ;;  %v406_v13 = vsel %vm399_vm1, %v393_v4, 0.0 }
 0x2cb   :  { %v363_v3 = vpop.f32.mrf.mxu1 }
 0x2cc   :  { %v364_v5 = vadd.f32 %v1407_v52, %v363_v3  ;;  %v400_v0 = vsel %vm399_vm1, %v391_v63, 0.0  ;;  %v394_v8 = vmax.f32 %v372_v2, 0.0 }
 0x2cd   :  { %401 = vadd.xlane.f32.xlu0 %v400_v0  ;;  %v1532_v6 = vpop.f32.mrf.mxu1  ;;  %v1752_v0 = vmov 0.0  }
 0x2ce   :  { %v392_v7 = vmax.f32 %v364_v5, 0.0  ;;  %v385_v10 = vadd.f32 %v1532_v6, %v1407_v52  ;;  %v409_v17 = vsel %vm399_vm1, %v394_v8, 0.0  ;;  %v1642_v5 = vld [vmem:[%s2219_s6] sm:$0xff]   ;;  %1562 = vmatprep.subr.bf16.mxu1 %v1752_v0  ;;  %v1993_v6 = vld [vmem:[%s2221_s8 + $0x8] sm:$0xff]   ;;  %1566 = vmatprep.mubr.msk.bf16.mxu1 %vm1753_vm2, %v1752_v0 }
 0x2cf   :  { %v376_v9 = vpop.f32.mrf.mxu1  ;;  %1563 = vmatpush3.bf16.msra.mxu1 %v1993_v6 }
 0x2d0   :  { %v377_v11 = vadd.f32 %v1407_v52, %v376_v9  ;;  %v403_v12 = vsel %vm399_vm1, %v392_v7, 0.0  ;;  %v397_v18 = vmax.f32 %v385_v10, 0.0  ;;  %1564 = vmatprep.subr.bf16.mxu1 %v1752_v0  ;;  %v1423_v9 = vld [vmem:[%s2222_s9] ss:$0 sm:$0xff] }
 0x2d1   :  { %404 = vadd.xlane.f32.xlu1 %v403_v12  ;;  %407 = vadd.xlane.f32.xlu0 %v406_v13  ;;  %v1533_v14 = vpop.f32.mrf.mxu1 }
 0x2d2   :  { %v395_v15 = vmax.f32 %v377_v11, 0.0  ;;  %v388_v19 = vadd.f32 %v1533_v14, %v1407_v52  ;;  %v418_v25 = vsel %vm399_vm1, %v397_v18, 0.0 }
 0x2d3   :  { %v379_v16 = vpop.f32.mrf.mxu1 }
 0x2d4   :  { %v380_v20 = vadd.f32 %v1407_v52, %v379_v16  ;;  %v412_v21 = vsel %vm399_vm1, %v395_v15, 0.0  ;;  %v398_v23 = vmax.f32 %v388_v19, 0.0 }
 0x2d5   :  { %410 = vadd.xlane.f32.xlu1 %v409_v17  ;;  %413 = vadd.xlane.f32.xlu0 %v412_v21 }
 0x2d6   :  { %v396_v22 = vmax.f32 %v380_v20, 0.0  ;;  %v421_v26 = vsel %vm399_vm1, %v398_v23, 0.0 }
 0x2d8   :  { %v415_v24 = vsel %vm399_vm1, %v396_v22, 0.0 }
 0x2d9   :  { %416 = vadd.xlane.f32.xlu1 %v415_v24  ;;  %419 = vadd.xlane.f32.xlu0 %v418_v25 }
 0x2dd   :  { %422 = vadd.xlane.f32.xlu1 %v421_v26 }
 0x356   :  { %v402_v27 = vpop.xlane.xlu0 %401 }
 0x357   :  { %v425_v28 = vmul.f32 0.03125, %v402_v27 }
 0x359   :  { %v1942_v29 = vsub.f32 %v391_v63, %v425_v28 }
 0x35a   :  { %v405_v30 = vpop.xlane.xlu1 %404  ;;  %v408_v31 = vpop.xlane.xlu0 %407 }
 0x35b   :  { %v426_v32 = vmul.f32 0.03125, %v405_v30  ;;  %v427_v33 = vmul.f32 0.03125, %v408_v31  ;;  %v441_v34 = vmul.f32 %v1942_v29, %v1942_v29 }
 0x35d   :  { %v1946_v35 = vsub.f32 %v392_v7, %v426_v32  ;;  %v1948_v36 = vsub.f32 %v393_v4, %v427_v33  ;;  %v449_v37 = vsel %vm399_vm1, %v441_v34, 0.0  ;;  %v1641_v4 = vld [vmem:[%s2219_s6 + $0x8] sm:$0xff]   ;;  %v2000_v7 = vld [vmem:[%s2221_s8] sm:$0xff]  }
 0x35e   :  { %v411_v38 = vpop.xlane.xlu1 %410  ;;  %450 = vadd.xlane.f32.xlu0 %v449_v37  ;;  %v414_v39 = vpop.xlane.xlu0 %413  ;;  %1534 = vmatprep.subr.bf16.mxu0 %v1641_v4 }
 0x35f   :  { %v428_v40 = vmul.f32 0.03125, %v411_v38  ;;  %v429_v41 = vmul.f32 0.03125, %v414_v39  ;;  %v442_v42 = vmul.f32 %v1946_v35, %v1946_v35  ;;  %v443_v43 = vmul.f32 %v1948_v36, %v1948_v36  ;;  %1535 = vmatpush3.bf16.msra.mxu0 %v1641_v4  ;;  %1565 = vmatpush3.bf16.msra.mxu1 %v2000_v7 }
 0x360   :  { %1536 = vmatprep.subr.bf16.mxu0 %v1642_v5  ;;  %1578 = vmatprep.subr.bf16.mxu1 %v1752_v0 }
 0x361   :  { %v1955_v45 = vsub.f32 %v394_v8, %v428_v40  ;;  %v1957_v47 = vsub.f32 %v395_v15, %v429_v41  ;;  %v452_v48 = vsel %vm399_vm1, %v442_v42, 0.0  ;;  %v455_v49 = vsel %vm399_vm1, %v443_v43, 0.0 }
 0x362   :  { %453 = vadd.xlane.f32.xlu1 %v452_v48  ;;  %v417_v51 = vpop.xlane.xlu1 %416  ;;  %456 = vadd.xlane.f32.xlu0 %v455_v49  ;;  %v420_v53 = vpop.xlane.xlu0 %419  ;;  %v1754_v8 = vmov 0  }
 0x363   :  { %v430_v54 = vmul.f32 0.03125, %v417_v51  ;;  %v431_v55 = vmul.f32 0.03125, %v420_v53  ;;  %v444_v57 = vmul.f32 %v1955_v45, %v1955_v45  ;;  %v445_v44 = vmul.f32 %v1957_v47, %v1957_v47  ;;  %1537 = vmatpush3.bf16.msra.mxu0 %v1642_v5  ;;  %1630 = vset.pattern.permute.xlu1 %v1754_v8 }
 0x364   :  { %1546 = vmatprep.subr.bf16.mxu0 %v1752_v0  ;;  %1631 = vset.pattern.permute.xlu0 %v1754_v8 }
 0x365   :  { %v1965_v58 = vsub.f32 %v396_v22, %v430_v54  ;;  %v1967_v50 = vsub.f32 %v397_v18, %v431_v55  ;;  %v458_v59 = vsel %vm399_vm1, %v444_v57, 0.0  ;;  %v461_v60 = vsel %vm399_vm1, %v445_v44, 0.0 }
 0x366   :  { %459 = vadd.xlane.f32.xlu1 %v458_v59  ;;  %v423_v46 = vpop.xlane.xlu1 %422  ;;  %462 = vadd.xlane.f32.xlu0 %v461_v60 }
 0x367   :  { %v432_v52 = vmul.f32 0.03125, %v423_v46  ;;  %v446_v61 = vmul.f32 %v1965_v58, %v1965_v58  ;;  %v447_v62 = vmul.f32 %v1967_v50, %v1967_v50 }
 0x369   :  { %v1975_v56 = vsub.f32 %v398_v23, %v432_v52  ;;  %v464_v1 = vsel %vm399_vm1, %v446_v61, 0.0  ;;  %v467_v63 = vsel %vm399_vm1, %v447_v62, 0.0 }
 0x36a   :  { %465 = vadd.xlane.f32.xlu1 %v464_v1  ;;  %468 = vadd.xlane.f32.xlu0 %v467_v63 }
 0x36b   :  { %v448_v2 = vmul.f32 %v1975_v56, %v1975_v56 }
 0x36d   :  { %v470_v3 = vsel %vm399_vm1, %v448_v2, 0.0 }
 0x36e   :  { %471 = vadd.xlane.f32.xlu1 %v470_v3 }
 0x380   :  { %685 = vrot.lane.b32.xlu0 %v1423_v9, %s1755_s20 }
 0x3e7   :  { %v451_v10 = vpop.xlane.xlu0 %450 }
 0x3e8   :  { %v473_v11 = vmul.f32 0.03125, %v451_v10 }
 0x3ea   :  { %v481_v12 = vadd.f32 1e-05, %v473_v11 }
 0x3eb   :  { %v454_v13 = vpop.xlane.xlu1 %453  ;;  %v457_v14 = vpop.xlane.xlu0 %456 }
 0x3ec   :  { %v474_v15 = vmul.f32 0.03125, %v454_v13  ;;  %v475_v16 = vmul.f32 0.03125, %v457_v14  ;;  %1664 = vrsqrt.f32 %v481_v12 }
 0x3ee   :  { %v482_v17 = vadd.f32 1e-05, %v474_v15  ;;  %v483_v18 = vadd.f32 1e-05, %v475_v16 }
 0x3ef   :  { %v460_v19 = vpop.xlane.xlu1 %459  ;;  %v463_v20 = vpop.xlane.xlu0 %462 }
 0x3f0   :  { %1666 = vrsqrt.f32 %v482_v17  ;;  %v476_v21 = vmul.f32 0.03125, %v460_v19  ;;  %v477_v22 = vmul.f32 0.03125, %v463_v20 }
 0x3f1   :  { %1668 = vrsqrt.f32 %v483_v18 }
 0x3f2   :  { %v484_v23 = vadd.f32 1e-05, %v476_v21  ;;  %v485_v24 = vadd.f32 1e-05, %v477_v22 }
 0x3f3   :  { %v466_v25 = vpop.xlane.xlu1 %465  ;;  %v469_v26 = vpop.xlane.xlu0 %468 }
 0x3f4   :  { %1670 = vrsqrt.f32 %v484_v23  ;;  %v478_v27 = vmul.f32 0.03125, %v466_v25  ;;  %v479_v28 = vmul.f32 0.03125, %v469_v26 }
 0x3f5   :  { %1672 = vrsqrt.f32 %v485_v24 }
 0x3f6   :  { %v486_v30 = vadd.f32 1e-05, %v478_v27  ;;  %v487_v31 = vadd.f32 1e-05, %v479_v28 }
 0x3f7   :  { %v472_v32 = vpop.xlane.xlu1 %471 }
 0x3f8   :  { %1674 = vrsqrt.f32 %v486_v30  ;;  %v480_v33 = vmul.f32 0.03125, %v472_v32 }
 0x3f9   :  { %1676 = vrsqrt.f32 %v487_v31  ;;  %v1665_v37 = vpop.eup %1664 }
 0x3fa   :  { %v488_v34 = vadd.f32 1e-05, %v480_v33  ;;  %v497_v39 = vmul.f32 %v1665_v37, %v1942_v29 }
 0x3fc   :  { %1678 = vrsqrt.f32 %v488_v34 }
 0x3fd   :  { %v1667_v38 = vpop.eup %1666 }
 0x3fe   :  { %v498_v40 = vmul.f32 %v1667_v38, %v1946_v35  ;;  %v1669_v41 = vpop.eup %1668 }
 0x3ff   :  { %v499_v48 = vmul.f32 %v1669_v41, %v1948_v36 }
 0x400   :  { %v509_v42 = vpack.c.bf16 %v498_v40, %v497_v39 }
 0x401   :  { %v1671_v43 = vpop.eup %1670 }
 0x402   :  { %v500_v49 = vmul.f32 %v1671_v43, %v1955_v45  ;;  %1538 = vmatprep.mubr.msk.bf16.mxu0 %vm399_vm1, %v509_v42  ;;  %v1673_v51 = vpop.eup %1672 }
 0x403   :  { %v501_v55 = vmul.f32 %v1673_v51, %v1957_v47  ;;  %v1416_v47 = vld [vmem:[%s2220_s7] ss:$0 sm:$0xff]  ;;  %s1756_s7 = smov 96  }
 0x404   :  { %v510_v53 = vpack.c.bf16 %v500_v49, %v499_v48 }
 0x405   :  { %v1675_v54 = vpop.eup %1674 }
 0x406   :  { %1539 = vmatmul.mubr.msk.bf16.vlgmr.msra.gmra.mxu0 %vm399_vm1, %v510_v53  ;;  %v502_v29 = vmul.f32 %v1675_v54, %v1965_v58  ;;  %v1677_v57 = vpop.eup %1676 }
 0x407   :  { %1547 = vmatpush3.bf16.msra.mxu0 %v1993_v6  ;;  %v503_v45 = vmul.f32 %v1677_v57, %v1967_v50 }
 0x408   :  { %v511_v35 = vpack.c.bf16 %v502_v29, %v501_v55  ;;  %1548 = vmatprep.subr.bf16.mxu0 %v1752_v0 }
 0x409   :  { %v1679_v36 = vpop.eup %1678 }
 0x40a   :  { %1542 = vmatprep.mubr.msk.bf16.mxu0 %vm399_vm1, %v511_v35  ;;  %v504_v44 = vmul.f32 %v1679_v36, %v1975_v56 }
 0x40b   :  { %1549 = vmatpush3.bf16.msra.mxu0 %v2000_v7 }
 0x40c   :  { %v512_v59 = vpack.c.bf16 %v504_v44, %v503_v45  ;;  %1554 = vmatprep.subr.bf16.mxu0 %v1752_v0 }
 0x40e   :  { %1543 = vmatmul.mubr.msk.bf16.gmra.mxu0 %vm399_vm1, %v512_v59 }
 0x40f   :  { %1550 = vmatprep.mubr.msk.bf16.mxu0 %vm1753_vm2, %v1752_v0 }
 0x416   :  { %1551 = vmatmul.mubr.bf16.vlgmr.msra.gmra.mxu0 %v1754_v8  ;;  %v2052_v8 = vpop.permute.xlu0 %685 }
 0x417   :  { %1555 = vmatpush3.bf16.msra.mxu0 %v1993_v6  ;;  %1558 = vmatprep.mubr.msk.bf16.mxu0 %vm1753_vm2, %v1752_v0 }
 0x418   :  { %1556 = vmatprep.subr.bf16.mxu0 %v1752_v0 }
 0x41b   :  { %1557 = vmatpush3.bf16.msra.mxu0 %v2000_v7 }
 0x41c   :  { %1570 = vmatprep.subr.bf16.mxu0 %v1752_v0 }
 0x4c6   :  { %v1540_v58 = vpop.f32.mrf.mxu0 }
 0x4c7   :  { %v2040_v50 = vadd.f32 %v1540_v58, %v1416_v47 }
 0x4c8   :  { %v578_v60 = vpop.f32.mrf.mxu0 }
 0x4c9   :  { %v579_v15 = vadd.f32 %v1416_v47, %v578_v60 }
 0x4ca   :  { %v1541_v46 = vpop.f32.mrf.mxu0 }
 0x4cb   :  { %v2042_v52 = vadd.f32 %v1541_v46, %v1416_v47 }
 0x4cc   :  { %v581_v61 = vpop.f32.mrf.mxu0 }
 0x4cd   :  { %v2044_v62 = vadd.f32 %v1416_v47, %v581_v61 }
 0x4ce   :  { %v1544_v56 = vpop.f32.mrf.mxu0 }
 0x4cf   :  { %v2046_v1 = vadd.f32 %v1544_v56, %v1416_v47 }
 0x4d0   :  { %v594_v63 = vpop.f32.mrf.mxu0 }
 0x4d1   :  { %v2048_v2 = vadd.f32 %v1416_v47, %v594_v63 }
 0x4d2   :  { %v1545_v3 = vpop.f32.mrf.mxu0 }
 0x4d3   :  { %v2050_v4 = vadd.f32 %v1545_v3, %v1416_v47 }
 0x4d4   :  { %v597_v5 = vpop.f32.mrf.mxu0 }
 0x4d5   :  { %v2054_v9 = vadd.f32 %v1416_v47, %v597_v5 }
 0x4d6   :  { %v672_v10 = vpop.f32.mrf.mxu0 }
 0x4d7   :  { %v688_v11 = vadd.f32 %v2052_v8, %v672_v10  ;;  %v678_v16 = vadd.f32 %v672_v10, %v579_v15 }
 0x4d8   :  { %v1552_v12 = vpop.f32.mrf.mxu0 }
 0x4d9   :  { %690 = vrot.lane.b32.xlu1 %v688_v11, %s1755_s20  ;;  %v1426_v17 = vmul.f32 -1.442695, %v678_v16 }
 0x4da   :  { %v675_v13 = vpop.f32.mrf.mxu0 }
 0x4db   :  { %1680 = vpow2.f32 %v1426_v17 }
 0x4dc   :  { %v1553_v14 = vpop.f32.mrf.mxu0 }
 0x4e8   :  { %v1681_v18 = vpop.eup %1680 }
 0x4e9   :  { %v682_v19 = vadd.f32 1.0, %v1681_v18 }
 0x4eb   :  { %1682 = vrcp.f32 %v682_v19 }
 0x4f8   :  { %v1683_v20 = vpop.eup %1682 }
 0x4f9   :  { %v700_v26 = vsub.f32 1.0, %v1683_v20  ;;  %v706_v28 = vmul.f32 0.0, %v1683_v20 }
 0x54b   :  { %v691_v21 = vpop.permute.xlu1 %690 }
 0x54c   :  { %v693_v22 = vmul.f32 %v1683_v20, %v691_v21 }
 0x54e   :  { %695 = vrot.lane.b32.xlu1 %v693_v22, %s1755_s20 }
 0x5c0   :  { %v696_v23 = vpop.permute.xlu1 %695 }
 0x5c1   :  { %v698_v24 = vadd.f32 %v696_v23, %v579_v15 }
 0x5c3   :  { %1684 = vtanh.f32 %v698_v24 }
 0x5d0   :  { %v1685_v25 = vpop.eup %1684 }
 0x5d1   :  { %702 = vrot.lane.b32.xlu1 %v1685_v25, %s1756_s7 }
 0x643   :  { %v703_v27 = vpop.permute.xlu1 %702 }
 0x644   :  { %v705_v30 = vmul.f32 %v703_v27, %v700_v26 }
 0x646   :  { %v2060_v31 = vadd.f32 %v706_v28, %v705_v30 }
 0x648   :  { %v710_v32 = vpack.c.bf16 %v2060_v31, %v2060_v31 }
 0x64a   :  { %712 = vrot.lane.b32.xlu0 %v710_v32, %s1756_s7 }
 0x6bc   :  { %v713_v33 = vpop.permute.xlu0 %712 }
 0x6bd   :  { %1559 = vmatmul.mubr.msk.bf16.vlgmr.msra.gmra.mxu0 %vm399_vm1, %v713_v33 }
 0x6be   :  { %1571 = vmatpush3.bf16.msra.mxu0 %v1993_v6  ;;  %1574 = vmatprep.mubr.msk.bf16.mxu0 %vm1753_vm2, %v1752_v0 }
 0x6bf   :  { %1572 = vmatprep.subr.bf16.mxu0 %v1752_v0 }
 0x6c2   :  { %1573 = vmatpush3.bf16.msra.mxu0 %v2000_v7 }
 0x6c3   :  { %1586 = vmatprep.subr.bf16.mxu0 %v1752_v0 }
 0x77d   :  { %v751_v34 = vpop.f32.mrf.mxu0 }
 0x77e   :  { %v764_v37 = vadd.f32 %v751_v34, %v2052_v8  ;;  %v757_v41 = vadd.f32 %v751_v34, %v2044_v62 }
 0x77f   :  { %v1560_v38 = vpop.f32.mrf.mxu0 }
 0x780   :  { %766 = vrot.lane.b32.xlu1 %v764_v37, %s1755_s20  ;;  %v1428_v42 = vmul.f32 -1.442695, %v757_v41 }
 0x781   :  { %v754_v39 = vpop.f32.mrf.mxu0 }
 0x782   :  { %1686 = vpow2.f32 %v1428_v42 }
 0x783   :  { %v1561_v40 = vpop.f32.mrf.mxu0 }
 0x78f   :  { %v1687_v43 = vpop.eup %1686 }
 0x790   :  { %v761_v48 = vadd.f32 1.0, %v1687_v43 }
 0x792   :  { %1688 = vrcp.f32 %v761_v48 }
 0x79f   :  { %v1689_v49 = vpop.eup %1688 }
 0x7a0   :  { %v776_v57 = vsub.f32 1.0, %v1689_v49  ;;  %v782_v36 = vmul.f32 %v1689_v49, %v2060_v31 }
 0x7f2   :  { %v767_v51 = vpop.permute.xlu1 %766 }
 0x7f3   :  { %v769_v53 = vmul.f32 %v1689_v49, %v767_v51 }
 0x7f5   :  { %771 = vrot.lane.b32.xlu0 %v769_v53, %s1755_s20 }
 0x867   :  { %v772_v54 = vpop.permute.xlu0 %771 }
 0x868   :  { %v774_v55 = vadd.f32 %v772_v54, %v2044_v62 }
 0x86a   :  { %1690 = vtanh.f32 %v774_v55 }
 0x877   :  { %v1691_v29 = vpop.eup %1690 }
 0x878   :  { %778 = vrot.lane.b32.xlu1 %v1691_v29, %s1756_s7 }
 0x8ea   :  { %v779_v35 = vpop.permute.xlu1 %778 }
 0x8eb   :  { %v781_v45 = vmul.f32 %v779_v35, %v776_v57 }
 0x8ed   :  { %v2079_v44 = vadd.f32 %v782_v36, %v781_v45 }
 0x8ef   :  { %v786_v59 = vpack.c.bf16 %v2079_v44, %v2079_v44 }
 0x8f1   :  { %788 = vrot.lane.b32.xlu0 %v786_v59, %s1756_s7 }
 0x963   :  { %v789_v47 = vpop.permute.xlu0 %788 }
 0x964   :  { %1567 = vmatmul.mubr.msk.bf16.vlgmr.msra.gmra.mxu1 %vm399_vm1, %v789_v47 }
 0x965   :  { %1579 = vmatpush3.bf16.msra.mxu1 %v1993_v6  ;;  %1582 = vmatprep.mubr.msk.bf16.mxu1 %vm1753_vm2, %v1752_v0 }
 0x966   :  { %1580 = vmatprep.subr.bf16.mxu1 %v1752_v0 }
 0x969   :  { %1581 = vmatpush3.bf16.msra.mxu1 %v2000_v7 }
 0x96a   :  { %1594 = vmatprep.subr.bf16.mxu1 %v1752_v0 }
 0xa24   :  { %v827_v58 = vpop.f32.mrf.mxu1 }
 0xa25   :  { %v840_v60 = vadd.f32 %v827_v58, %v2052_v8  ;;  %v833_v56 = vadd.f32 %v827_v58, %v2040_v50 }
 0xa26   :  { %v1568_v46 = vpop.f32.mrf.mxu1 }
 0xa27   :  { %842 = vrot.lane.b32.xlu1 %v840_v60, %s1755_s20  ;;  %v1430_v63 = vmul.f32 -1.442695, %v833_v56 }
 0xa28   :  { %v830_v61 = vpop.f32.mrf.mxu1 }
 0xa29   :  { %1692 = vpow2.f32 %v1430_v63 }
 0xa2a   :  { %v1569_v62 = vpop.f32.mrf.mxu1 }
 0xa36   :  { %v1693_v3 = vpop.eup %1692 }
 0xa37   :  { %v837_v5 = vadd.f32 1.0, %v1693_v3 }
 0xa39   :  { %1694 = vrcp.f32 %v837_v5 }
 0xa46   :  { %v1695_v10 = vpop.eup %1694 }
 0xa47   :  { %v852_v16 = vsub.f32 1.0, %v1695_v10  ;;  %v858_v18 = vmul.f32 %v1695_v10, %v2079_v44 }
 0xa99   :  { %v843_v11 = vpop.permute.xlu1 %842 }
 0xa9a   :  { %v845_v12 = vmul.f32 %v1695_v10, %v843_v11 }
 0xa9c   :  { %847 = vrot.lane.b32.xlu0 %v845_v12, %s1755_s20 }
 0xb0e   :  { %v848_v13 = vpop.permute.xlu0 %847 }
 0xb0f   :  { %v850_v14 = vadd.f32 %v848_v13, %v2040_v50 }
 0xb11   :  { %1696 = vtanh.f32 %v850_v14 }
 0xb1e   :  { %v1697_v15 = vpop.eup %1696 }
 0xb1f   :  { %854 = vrot.lane.b32.xlu1 %v1697_v15, %s1756_s7 }
 0xb91   :  { %v855_v17 = vpop.permute.xlu1 %854 }
 0xb92   :  { %v857_v19 = vmul.f32 %v855_v17, %v852_v16 }
 0xb94   :  { %v2098_v20 = vadd.f32 %v858_v18, %v857_v19 }
 0xb96   :  { %v862_v21 = vpack.c.bf16 %v2098_v20, %v2098_v20 }
 0xb98   :  { %864 = vrot.lane.b32.xlu0 %v862_v21, %s1756_s7 }
 0xc0a   :  { %v865_v22 = vpop.permute.xlu0 %864 }
 0xc0b   :  { %1575 = vmatmul.mubr.msk.bf16.vlgmr.msra.gmra.mxu0 %vm399_vm1, %v865_v22 }
 0xc0c   :  { %1587 = vmatpush3.bf16.msra.mxu0 %v1993_v6  ;;  %1590 = vmatprep.mubr.msk.bf16.mxu0 %vm1753_vm2, %v1752_v0 }
 0xc0d   :  { %1588 = vmatprep.subr.bf16.mxu0 %v1752_v0 }
 0xc10   :  { %1589 = vmatpush3.bf16.msra.mxu0 %v2000_v7 }
 0xc11   :  { %1602 = vmatprep.subr.bf16.mxu0 %v1752_v0 }
 0xccb   :  { %v903_v50 = vpop.f32.mrf.mxu0 }
 0xccc   :  { %v916_v23 = vadd.f32 %v903_v50, %v2052_v8  ;;  %v909_v27 = vadd.f32 %v903_v50, %v2042_v52 }
 0xccd   :  { %v1576_v24 = vpop.f32.mrf.mxu0 }
 0xcce   :  { %918 = vrot.lane.b32.xlu1 %v916_v23, %s1755_s20  ;;  %v1432_v28 = vmul.f32 -1.442695, %v909_v27 }
 0xccf   :  { %v906_v25 = vpop.f32.mrf.mxu0 }
 0xcd0   :  { %1698 = vpow2.f32 %v1432_v28 }
 0xcd1   :  { %v1577_v26 = vpop.f32.mrf.mxu0 }
 0xcdd   :  { %v1699_v30 = vpop.eup %1698 }
 0xcde   :  { %v913_v32 = vadd.f32 1.0, %v1699_v30 }
 0xce0   :  { %1700 = vrcp.f32 %v913_v32 }
 0xced   :  { %v1701_v33 = vpop.eup %1700 }
 0xcee   :  { %v928_v41 = vsub.f32 1.0, %v1701_v33  ;;  %v934_v43 = vmul.f32 %v1701_v33, %v2098_v20 }
 0xd40   :  { %v919_v34 = vpop.permute.xlu1 %918 }
 0xd41   :  { %v921_v37 = vmul.f32 %v1701_v33, %v919_v34 }
 0xd43   :  { %923 = vrot.lane.b32.xlu0 %v921_v37, %s1755_s20 }
 0xdb5   :  { %v924_v38 = vpop.permute.xlu0 %923 }
 0xdb6   :  { %v926_v39 = vadd.f32 %v924_v38, %v2042_v52 }
 0xdb8   :  { %1702 = vtanh.f32 %v926_v39 }
 0xdc5   :  { %v1703_v40 = vpop.eup %1702 }
 0xdc6   :  { %930 = vrot.lane.b32.xlu1 %v1703_v40, %s1756_s7 }
 0xe38   :  { %v931_v42 = vpop.permute.xlu1 %930 }
 0xe39   :  { %v933_v48 = vmul.f32 %v931_v42, %v928_v41 }
 0xe3b   :  { %v2117_v49 = vadd.f32 %v934_v43, %v933_v48 }
 0xe3d   :  { %v938_v51 = vpack.c.bf16 %v2117_v49, %v2117_v49 }
 0xe3f   :  { %940 = vrot.lane.b32.xlu0 %v938_v51, %s1756_s7 }
 0xeb1   :  { %v941_v53 = vpop.permute.xlu0 %940 }
 0xeb2   :  { %1583 = vmatmul.mubr.msk.bf16.vlgmr.msra.gmra.mxu1 %vm399_vm1, %v941_v53 }
 0xeb3   :  { %1595 = vmatpush3.bf16.msra.mxu1 %v1993_v6  ;;  %1598 = vmatprep.mubr.msk.bf16.mxu1 %vm1753_vm2, %v1752_v0 }
 0xeb4   :  { %1596 = vmatprep.subr.bf16.mxu1 %v1752_v0 }
 0xeb7   :  { %1597 = vmatpush3.bf16.msra.mxu1 %v2000_v7 }
 0xeb8   :  { %1610 = vmatprep.subr.bf16.mxu1 %v1752_v0 }
 0xf72   :  { %v979_v52 = vpop.f32.mrf.mxu1 }
 0xf73   :  { %v992_v54 = vadd.f32 %v979_v52, %v2052_v8  ;;  %v985_v35 = vadd.f32 %v979_v52, %v2048_v2 }
 0xf74   :  { %v1584_v55 = vpop.f32.mrf.mxu1 }
 0xf75   :  { %994 = vrot.lane.b32.xlu1 %v992_v54, %s1755_s20  ;;  %v1434_v36 = vmul.f32 -1.442695, %v985_v35 }
 0xf76   :  { %v982_v29 = vpop.f32.mrf.mxu1 }
 0xf77   :  { %1704 = vpow2.f32 %v1434_v36 }
 0xf78   :  { %v1585_v57 = vpop.f32.mrf.mxu1 }
 0xf84   :  { %v1705_v45 = vpop.eup %1704 }
 0xf85   :  { %v989_v59 = vadd.f32 1.0, %v1705_v45 }
 0xf87   :  { %1706 = vrcp.f32 %v989_v59 }
 0xf94   :  { %v1707_v47 = vpop.eup %1706 }
 0xf95   :  { %v1004_v56 = vsub.f32 1.0, %v1707_v47  ;;  %v1010_v3 = vmul.f32 %v1707_v47, %v2117_v49 }
 0xfe7   :  { %v995_v58 = vpop.permute.xlu1 %994 }
 0xfe8   :  { %v997_v60 = vmul.f32 %v1707_v47, %v995_v58 }
 0xfea   :  { %999 = vrot.lane.b32.xlu0 %v997_v60, %s1755_s20 }
0x105c   :  { %v1000_v46 = vpop.permute.xlu0 %999 }
0x105d   :  { %v1002_v61 = vadd.f32 %v1000_v46, %v2048_v2 }
0x105f   :  { %1708 = vtanh.f32 %v1002_v61  ;;  %v619_v61 = vld [vmem:[%s2214_s1] sm:$0xff] }
0x106c   :  { %v1709_v62 = vpop.eup %1708 }
0x106d   :  { %1006 = vrot.lane.b32.xlu1 %v1709_v62, %s1756_s7 }
0x10df   :  { %v1007_v63 = vpop.permute.xlu1 %1006 }
0x10e0   :  { %v1009_v5 = vmul.f32 %v1007_v63, %v1004_v56 }
0x10e2   :  { %v2136_v10 = vadd.f32 %v1010_v3, %v1009_v5 }
0x10e4   :  { %v1014_v11 = vpack.c.bf16 %v2136_v10, %v2136_v10 }
0x10e6   :  { %1016 = vrot.lane.b32.xlu0 %v1014_v11, %s1756_s7 }
0x1158   :  { %v1017_v12 = vpop.permute.xlu0 %1016 }
0x1159   :  { %1591 = vmatmul.mubr.msk.bf16.vlgmr.msra.gmra.mxu0 %vm399_vm1, %v1017_v12 }
0x115a   :  { %1603 = vmatpush3.bf16.msra.mxu0 %v1993_v6  ;;  %1606 = vmatprep.mubr.msk.bf16.mxu0 %vm1753_vm2, %v1752_v0 }
0x115b   :  { %1604 = vmatprep.subr.bf16.mxu0 %v1752_v0 }
0x115e   :  { %1605 = vmatpush3.bf16.msra.mxu0 %v2000_v7 }
0x115f   :  { %1618 = vmatprep.subr.bf16.mxu0 %v1752_v0 }
0x1219   :  { %v1055_v2 = vpop.f32.mrf.mxu0 }
0x121a   :  { %v1068_v13 = vadd.f32 %v1055_v2, %v2052_v8  ;;  %v1061_v17 = vadd.f32 %v1055_v2, %v2054_v9 }
0x121b   :  { %v1592_v14 = vpop.f32.mrf.mxu0 }
0x121c   :  { %1070 = vrot.lane.b32.xlu1 %v1068_v13, %s1755_s20  ;;  %v1436_v6 = vmul.f32 -1.442695, %v1061_v17  ;;  %v1645_v14 = vld [vmem:[%s2223_s10 + $0x8] sm:$0xff]  }
0x121d   :  { %v1058_v15 = vpop.f32.mrf.mxu0 }
0x121e   :  { %1710 = vpow2.f32 %v1436_v6  ;;  %v1646_v15 = vld [vmem:[%s2223_s10] sm:$0xff]  }
0x121f   :  { %v1593_v16 = vpop.f32.mrf.mxu0 }
0x122b   :  { %v1711_v18 = vpop.eup %1710 }
0x122c   :  { %v1065_v19 = vadd.f32 1.0, %v1711_v18 }
0x122e   :  { %1712 = vrcp.f32 %v1065_v19 }
0x123b   :  { %v1713_v21 = vpop.eup %1712 }
0x123c   :  { %v1080_v25 = vsub.f32 1.0, %v1713_v21  ;;  %v1086_v27 = vmul.f32 %v1713_v21, %v2136_v10 }
0x128e   :  { %v1071_v22 = vpop.permute.xlu1 %1070 }
0x128f   :  { %v1073_v7 = vmul.f32 %v1713_v21, %v1071_v22 }
0x1291   :  { %1075 = vrot.lane.b32.xlu0 %v1073_v7, %s1755_s20 }
0x1303   :  { %v1076_v50 = vpop.permute.xlu0 %1075 }
0x1304   :  { %v1078_v23 = vadd.f32 %v1076_v50, %v2054_v9 }
0x1306   :  { %1714 = vtanh.f32 %v1078_v23 }
0x1313   :  { %v1715_v24 = vpop.eup %1714 }
0x1314   :  { %1082 = vrot.lane.b32.xlu1 %v1715_v24, %s1756_s7 }
0x1386   :  { %v1083_v26 = vpop.permute.xlu1 %1082 }
0x1387   :  { %v1085_v28 = vmul.f32 %v1083_v26, %v1080_v25 }
0x1389   :  { %v2155_v30 = vadd.f32 %v1086_v27, %v1085_v28 }
0x138b   :  { %v1090_v32 = vpack.c.bf16 %v2155_v30, %v2155_v30 }
0x138d   :  { %1092 = vrot.lane.b32.xlu0 %v1090_v32, %s1756_s7 }
0x13ff   :  { %v1093_v33 = vpop.permute.xlu0 %1092 }
0x1400   :  { %1599 = vmatmul.mubr.msk.bf16.vlgmr.msra.gmra.mxu1 %vm399_vm1, %v1093_v33 }
0x1401   :  { %1614 = vmatprep.mubr.msk.bf16.mxu1 %vm1753_vm2, %v1752_v0  ;;  %1611 = vmatpush3.bf16.msra.mxu1 %v1645_v14 }
0x1402   :  { %1612 = vmatprep.subr.bf16.mxu1 %v1752_v0 }
0x1405   :  { %1613 = vmatpush3.bf16.msra.mxu1 %v1646_v15 }
0x14c0   :  { %v1131_v9 = vpop.f32.mrf.mxu1 }
0x14c1   :  { %v1144_v34 = vadd.f32 %v1131_v9, %v2052_v8  ;;  %v1137_v40 = vadd.f32 %v1131_v9, %v2046_v1 }
0x14c2   :  { %v1600_v37 = vpop.f32.mrf.mxu1 }
0x14c3   :  { %1146 = vrot.lane.b32.xlu1 %v1144_v34, %s1755_s20  ;;  %v1438_v41 = vmul.f32 -1.442695, %v1137_v40  ;;  %v1647_v40 = vld [vmem:[%s2225_s12] sm:$0xff]   ;;  %s1730_s12 = scalar_lea.vmem %s1394_s29, 128 }
0x14c4   :  { %v1134_v38 = vpop.f32.mrf.mxu1  ;;  %p1731_p0 = scmp.ne.s32.totalorder %s1394_s29, %s1730_s12  ;;  %p1736_p2 = scmp.lt.s32.totalorder %s1730_s12, %s1730_s12 }
0x14c5   :  { %1716 = vpow2.f32 %v1438_v41 }
0x14c6   :  { %v1601_v39 = vpop.f32.mrf.mxu1  ;;  %p1737_p3 = por %p1736_p2, %p1735_p1 }
0x14c8   :  { %p1738_p4 = pnand %p1737_p3, %p1731_p0 }
0x14d2   :  { %v1717_v42 = vpop.eup %1716 }
0x14d3   :  { %v1141_v43 = vadd.f32 1.0, %v1717_v42 }
0x14d5   :  { %1718 = vrcp.f32 %v1141_v43 }
0x14e2   :  { %v1719_v48 = vpop.eup %1718 }
0x14e3   :  { %v1156_v29 = vsub.f32 1.0, %v1719_v48  ;;  %v1162_v35 = vmul.f32 %v1719_v48, %v2155_v30 }
0x1535   :  { %v1147_v51 = vpop.permute.xlu1 %1146 }
0x1536   :  { %v1149_v53 = vmul.f32 %v1719_v48, %v1147_v51 }
0x1538   :  { %1151 = vrot.lane.b32.xlu0 %v1149_v53, %s1755_s20 }
0x15aa   :  { %v1152_v52 = vpop.permute.xlu0 %1151 }
0x15ab   :  { %v1154_v54 = vadd.f32 %v1152_v52, %v2046_v1  ;;  %v1445_v52 = vld [vmem:[%s2226_s13] ss:$0 sm:$0xff] }
0x15ad   :  { %1720 = vtanh.f32 %v1154_v54 }
0x15ba   :  { %v1721_v55 = vpop.eup %1720 }
0x15bb   :  { %1158 = vrot.lane.b32.xlu1 %v1721_v55, %s1756_s7 }
0x162d   :  { %v1159_v57 = vpop.permute.xlu1 %1158 }
0x162e   :  { %v1161_v36 = vmul.f32 %v1159_v57, %v1156_v29 }
0x1630   :  { %v1163_v45 = vadd.f32 %v1162_v35, %v1161_v36 }
0x1632   :  { %v1166_v59 = vpack.c.bf16 %v1163_v45, %v1163_v45 }
0x1634   :  { %1168 = vrot.lane.b32.xlu0 %v1166_v59, %s1756_s7 }
0x16a6   :  { %v1169_v47 = vpop.permute.xlu0 %1168 }
0x16a7   :  { %1607 = vmatmul.mubr.msk.bf16.vlgmr.msra.gmra.mxu0 %vm399_vm1, %v1169_v47 }
0x16a8   :  { %1620 = vmatprep.mubr.msk.bf16.mxu0 %vm1753_vm2, %v1752_v0  ;;  %1619 = vmatpush3.bf16.msra.mxu0 %v1647_v40 }
0x1767   :  { %v1207_v1 = vpop.f32.mrf.mxu0 }
0x1768   :  { %v1220_v58 = vadd.f32 %v1207_v1, %v2052_v8  ;;  %v1213_v56 = vadd.f32 %v1207_v1, %v2050_v4 }
0x1769   :  { %v1608_v60 = vpop.f32.mrf.mxu0 }
0x176a   :  { %1222 = vrot.lane.b32.xlu1 %v1220_v58, %s1755_s20  ;;  %v1440_v63 = vmul.f32 -1.442695, %v1213_v56 }
0x176b   :  { %v1210_v46 = vpop.f32.mrf.mxu0 }
0x176c   :  { %1722 = vpow2.f32 %v1440_v63 }
0x176d   :  { %v1609_v62 = vpop.f32.mrf.mxu0 }
0x176e   :  { %621 = vperm.xlu1 %1630, %v619_v61  }
0x1779   :  { %v1723_v3 = vpop.eup %1722 }
0x177a   :  { %v1217_v5 = vadd.f32 1.0, %v1723_v3 }
0x177c   :  { %1724 = vrcp.f32 %v1217_v5 }
0x1789   :  { %v1725_v11 = vpop.eup %1724 }
0x178a   :  { %v1232_v21 = vsub.f32 1.0, %v1725_v11  ;;  %v1238_v7 = vmul.f32 %v1725_v11, %v1163_v45 }
0x17dc   :  { %v1223_v12 = vpop.permute.xlu1 %1222 }
0x17dd   :  { %v1225_v8 = vmul.f32 %v1725_v11, %v1223_v12 }
0x17df   :  { %1227 = vrot.lane.b32.xlu0 %v1225_v8, %s1755_s20 }
0x17e9   :  { %v622_v17 = vpop.permute.xlu1 %621 }
0x17ea   :  { %vm708_vm3 = vcmp.eq.s32.totalorder %v622_v17, 0  ;;  %vm784_vm4 = vcmp.eq.s32.totalorder %v622_v17, 1  ;;  %vm860_vm5 = vcmp.eq.s32.totalorder %v622_v17, 2  ;;  %vm936_vm6 = vcmp.eq.s32.totalorder %v622_v17, 3 }
0x17eb   :  { %vm1012_vm7 = vcmp.eq.s32.totalorder %v622_v17, 4  ;;  %vm1088_vm8 = vcmp.eq.s32.totalorder %v622_v17, 5  ;;  %vm1164_vm9 = vcmp.eq.s32.totalorder %v622_v17, 6  ;;  %vm1240_vm10 = vcmp.eq.s32.totalorder %v622_v17, 7 }
0x1851   :  { %v1228_v2 = vpop.permute.xlu0 %1227 }
0x1852   :  { %v1230_v13 = vadd.f32 %v1228_v2, %v2050_v4  ;;  %v709_v4 = vsel %vm708_vm3, %v2060_v31, 0.0 }
0x1853   :  { %v785_v6 = vsel %vm784_vm4, %v2079_v44, %v709_v4 }
0x1854   :  { %1726 = vtanh.f32 %v1230_v13  ;;  %v861_v18 = vsel %vm860_vm5, %v2098_v20, %v785_v6 }
0x1855   :  { %v937_v19 = vsel %vm936_vm6, %v2117_v49, %v861_v18  ;;  %v1441_v49 = vld [vmem:[%s2224_s11] ss:$0 sm:$0xff] }
0x1856   :  { %v1013_v0 = vsel %vm1012_vm7, %v2136_v10, %v937_v19 }
0x1857   :  { %v1089_v23 = vsel %vm1088_vm8, %v2155_v30, %v1013_v0 }
0x1858   :  { %v1165_v24 = vsel %vm1164_vm9, %v1163_v45, %v1089_v23 }
0x1861   :  { %v1727_v16 = vpop.eup %1726 }
0x1862   :  { %1234 = vrot.lane.b32.xlu0 %v1727_v16, %s1756_s7 }
0x18d4   :  { %v1235_v22 = vpop.permute.xlu0 %1234 }
0x18d5   :  { %v1237_v50 = vmul.f32 %v1235_v22, %v1232_v21 }
0x18d7   :  { %v1239_v31 = vadd.f32 %v1238_v7, %v1237_v50 }
0x18d9   :  { %v1241_v44 = vsel %vm1240_vm10, %v1239_v31, %v1165_v24 }
0x18da   :  { %v1246_v25 = vpack.c.bf16 %v1241_v44, %v1241_v44 }
0x18dc   :  { %1255 = vrot.lane.b32.xlu1 %v1246_v25, %s1756_s7 }
0x194e   :  { %v1256_v20 = vpop.permute.xlu1 %1255 }
0x194f   :  { %1615 = vmatmul.mubr.msk.bf16.vlgmr.msra.gmra.mxu1 %vm399_vm1, %v1256_v20 }
0x1a0f   :  { %v1306_v10 = vpop.f32.mrf.mxu1 }
0x1a10   :  { %v1307_v26 = vadd.f32 %v1441_v49, %v1306_v10 }
0x1a11   :  { %v1616_v27 = vpop.f32.mrf.mxu1 }
0x1a12   :  { %v1312_v28 = vmax.f32 %v1307_v26, 0.0 }
0x1a13   :  { %v1309_v30 = vpop.f32.mrf.mxu1 }
0x1a14   :  { %v1313_v32 = vsel %vm76_vm0, %v1312_v28, 0.0 }
0x1a15   :  { %1314 = vadd.xlane.f32.xlu0 %v1313_v32  ;;  %v1617_v33 = vpop.f32.mrf.mxu1 }
0x1a9e   :  { %v1315_v9 = vpop.xlane.xlu0 %1314 }
0x1a9f   :  { %v1317_v34 = vmul.f32 0.0625, %v1315_v9 }
0x1aa1   :  { %v1318_v37 = vsub.f32 %v1312_v28, %v1317_v34 }
0x1aa3   :  { %v1319_v38 = vmul.f32 %v1318_v37, %v1318_v37 }
0x1aa5   :  { %v1320_v39 = vsel %vm76_vm0, %v1319_v38, 0.0 }
0x1aa6   :  { %1321 = vadd.xlane.f32.xlu1 %v1320_v39 }
0x1b2f   :  { %v1322_v41 = vpop.xlane.xlu1 %1321 }
0x1b30   :  { %v1323_v42 = vmul.f32 0.0625, %v1322_v41 }
0x1b32   :  { %v1324_v43 = vadd.f32 1e-05, %v1323_v42 }
0x1b34   :  { %1728 = vrsqrt.f32 %v1324_v43 }
0x1b41   :  { %v1729_v48 = vpop.eup %1728 }
0x1b42   :  { %v1326_v51 = vmul.f32 %v1729_v48, %v1318_v37 }
0x1b44   :  { %v1329_v53 = vpack.c.bf16 %v1326_v51, %v1326_v51 }
0x1b46   :  { %1621 = vmatmul.mubr.msk.bf16.vlgmr.msra.gmra.mxu0 %vm76_vm0, %v1329_v53 }
0x1c06   :  { %v1380_v54 = vpop.f32.mrf.mxu0 }
0x1c07   :  { %v1381_v55 = vadd.f32 %v1445_v52, %v1380_v54 }
0x1c08   :  { %v1622_v29 = vpop.f32.mrf.mxu0 }
0x1c09   :  { %1386 = vst [vmem:[#allocation2] sm:$0xff] %v1381_v55 }
0x1c0a   :  { %v1383_v57 = vpop.f32.mrf.mxu0 }
0x1c0b   :  { %1741 = shalt.err (!%p1738_p4)
}
0x1c0c   :  { %1396 = dma.vmem_to_hbm [thread:$0]  %s1394_s29, 128, %s2227_s14, [#allocation3]   ;;  %v1623_v35 = vpop.f32.mrf.mxu0 }
0x1c0d   :  { %1750 = dma.done.wait [#allocation3], 128  }
0x1c0e   :  { %1751 = vsyncadd [#allocation3], 4294967168 }
0x1c0f   :  { %1400 = vsyncpa [#allocation3], 1 }

</bundles_post_ra>
